<compile_context>
chip_gen: v7x
topology: tpu7x:2x2x1
jax: 0.10.0
libtpu: 0.0.40
codegen_flags: <defaults>
</compile_context>

<pallas_src>
import math

import jax
import jax.numpy as jnp
from jax import lax
from jax.experimental import pallas as pl
from jax.experimental.pallas import tpu as pltpu


def _encoder_lstm_kernel(x_ref, wx_ref, wh_ref, b_ref, hN_ref, cN_ref, seq_sc, gx_sc):
    """Whole EncoderLSTM stack. Grid axis 0 = layer (sequential / 'arbitrary').

    x_ref  : (T, B, D)     raw input sequence (only consumed by layer 0)
    wx_ref : (1, Kw, 4H)   this layer's input-projection weights W_ih^T, zero-row padded to
                           Kw = max(D, H); for layers >= 1 only rows [0:H] are nonzero
    wh_ref : (1, H, 4H)    this layer's recurrent weights W_hh^T
    b_ref  : (1, 1, 4H)    fused bias (b_ih + b_hh); g-gate columns pre-scaled by 2
    hN_ref : (1, B, H)     final hidden state of this layer
    cN_ref : (1, B, H)     final cell state of this layer
    seq_sc : (T, B, H)     VMEM scratch carrying the hidden sequence to the next layer
    gx_sc  : (T, B, 4H)    VMEM scratch holding the hoisted input projection (+ bias)
    """
    layer = pl.program_id(0)
    T, B, H = seq_sc.shape
    D = x_ref.shape[-1]
    H4 = 4 * H

    b = b_ref[0]  # (1, 4H) -- broadcast once, inside the single hoisted matmul add

    # ---- Hoisted input projection: one (T*B, K) x (K, 4H) MXU matmul per layer ------------
    # Layer 0 projects the raw input block; deeper layers project the hidden sequence written
    # by the layer below (seq_sc is fully read here BEFORE this layer's time loop overwrites it).
    @pl.when(layer == 0)
    def _():
        x2d = x_ref[...].reshape(T * B, D)
        gx = jnp.dot(x2d, wx_ref[0, :D, :], preferred_element_type=jnp.float32) + b
        gx_sc[...] = gx.reshape(T, B, H4)

    @pl.when(layer != 0)
    def _():
        s2d = seq_sc[...].reshape(T * B, H)
        gx = jnp.dot(s2d, wx_ref[0, :H, :], preferred_element_type=jnp.float32) + b
        gx_sc[...] = gx.reshape(T, B, H4)

    wh = wh_ref[0]  # (H, 4H), VMEM-resident for the whole layer

    # ---- Serial recurrence: only the small recurrent dot + gate math per step ---------------
    def step(t, carry):
        h, c = carry
        gates = gx_sc[t] + jnp.dot(h, wh, preferred_element_type=jnp.float32)   # (B, 4H)

        # Single full-width sigmoid over all four gates (PyTorch order i, f, g, o).
        # The g-gate pre-activation was scaled by 2 at weight-fusion time, so
        # tanh(x_g) == 2 * sigmoid(2 x_g) - 1 is recovered below -> half the EUP work.
        sig = jax.nn.sigmoid(gates)
        i_g = sig[:, 0 * H:1 * H]
        f_g = sig[:, 1 * H:2 * H]
        g_g = 2.0 * sig[:, 2 * H:3 * H] - 1.0
        o_g = sig[:, 3 * H:4 * H]

        c_new = f_g * c + i_g * g_g
        h_new = o_g * jnp.tanh(c_new)

        # Hidden sequence stays in VMEM and feeds the next layer's hoisted projection.
        seq_sc[t] = h_new
        return h_new, c_new

    h0 = jnp.zeros((B, H), jnp.float32)
    c0 = jnp.zeros((B, H), jnp.float32)
    unroll = True if T <= 32 else 8
    h_T, c_T = lax.fori_loop(0, T, step, (h0, c0), unroll=unroll)

    hN_ref[0] = h_T
    cN_ref[0] = c_T


def encoder_lstm_pallas(x_tbd, wx, wh, bias):
    """x_tbd: (T, B, D) f32 time-major input.
    wx: (L, Kw, 4H) padded input-projection weights; wh: (L, H, 4H) recurrent weights;
    bias: (L, 1, 4H) fused biases (g-columns pre-scaled). Returns (h_n, c_n), each (L, B, H)."""
    T, B, D = x_tbd.shape
    L, Kw, H4 = wx.shape
    H = H4 // 4
    assert wh.shape == (L, H, H4) and bias.shape == (L, 1, H4)
    assert Kw == max(D, H)

    return pl.pallas_call(
        _encoder_lstm_kernel,
        out_shape=(jax.ShapeDtypeStruct((L, B, H), jnp.float32),
                   jax.ShapeDtypeStruct((L, B, H), jnp.float32)),
        grid_spec=pltpu.PrefetchScalarGridSpec(
            num_scalar_prefetch=0,
            grid=(L,),
            in_specs=[
                # Input sequence: constant index map -> DMA'd once, VMEM-resident, read by layer 0.
                pl.BlockSpec((T, B, D), lambda l: (0, 0, 0)),
                # Per-layer weights / bias (layer l+1 auto-prefetched while computing layer l).
                pl.BlockSpec((1, Kw, H4), lambda l: (l, 0, 0)),
                pl.BlockSpec((1, H, H4), lambda l: (l, 0, 0)),
                pl.BlockSpec((1, 1, H4), lambda l: (l, 0, 0)),
            ],
            out_specs=[
                pl.BlockSpec((1, B, H), lambda l: (l, 0, 0)),
                pl.BlockSpec((1, B, H), lambda l: (l, 0, 0)),
            ],
            scratch_shapes=[
                pltpu.VMEM((T, B, H), jnp.float32),       # hidden sequence handed between layers
                pltpu.VMEM((T, B, 4 * H), jnp.float32),   # hoisted input projection for all t
            ],
        ),
        compiler_params=pltpu.CompilerParams(
            dimension_semantics=("arbitrary",)),   # layers are inherently sequential
    )(x_tbd, wx, wh, bias)


class EncoderLSTMPallas:
    """JAX/Pallas port of WewerForecast EncoderLSTM.forward: zero-init (h0, c0), run
    num_layers LSTM, return final (h_n, c_n), each (num_layers, B, H)."""

    def __init__(self, input_size, hidden_size, batch_first, num_layers, dropout, key):
        assert batch_first, "This port assumes batch_first=True (as implied by h0/c0 using x.shape[0])."
        self.input_size = input_size
        self.hidden_size = hidden_size
        self.num_layers = num_layers
        self.dropout = dropout

        H = hidden_size
        Kw = max(input_size, H)
        bound = 1.0 / math.sqrt(H)

        # Pre-scale the g-gate columns by 2 so the kernel can use a single full-width sigmoid
        # (tanh(x) == 2*sigmoid(2x) - 1). Gate order is PyTorch's [i, f, g, o].
        g_scale = jnp.ones((4 * H,), jnp.float32).at[2 * H:3 * H].set(2.0)

        wx_rows, wh_rows, b_rows = [], [], []
        self.ref_params = []   # unscaled/unfused per-layer params for the pure-JAX reference check
        for layer in range(num_layers):
            d_in = input_size if layer == 0 else H
            key, k1, k2, k3, k4 = jax.random.split(key, 5)
            w_ih = jax.random.uniform(k1, (4 * H, d_in), jnp.float32, -bound, bound)
            w_hh = jax.random.uniform(k2, (4 * H, H), jnp.float32, -bound, bound)
            b_ih = jax.random.uniform(k3, (4 * H,), jnp.float32, -bound, bound)
            b_hh = jax.random.uniform(k4, (4 * H,), jnp.float32, -bound, bound)

            # Input-projection weights zero-row padded to a uniform (Kw, 4H) shape so every
            # layer shares one BlockSpec; deeper layers only use rows [0:H] (kernel slices them).
            wx_l = (jnp.zeros((Kw, 4 * H), jnp.float32).at[:d_in].set(w_ih.T)) * g_scale[None, :]
            wh_l = w_hh.T * g_scale[None, :]
            b_l = ((b_ih + b_hh) * g_scale)[None, :]

            wx_rows.append(wx_l)
            wh_rows.append(wh_l)
            b_rows.append(b_l)
            self.ref_params.append((w_ih.T, w_hh.T, (b_ih + b_hh)[None, :]))

        self.wx = jnp.stack(wx_rows, axis=0)     # (L, Kw, 4H)
        self.wh = jnp.stack(wh_rows, axis=0)     # (L, H, 4H)
        self.bias = jnp.stack(b_rows, axis=0)    # (L, 1, 4H)

    def __call__(self, x_btd):
        # x_btd: (B, T, input_size), batch_first layout like the PyTorch module.
        x = jnp.transpose(x_btd, (1, 0, 2)).astype(jnp.float32)   # -> (T, B, D) time-major
        h_n, c_n = encoder_lstm_pallas(x, self.wx, self.wh, self.bias)
        return h_n, c_n


def _reference_lstm(x_btd, params, hidden_size):
    """Pure-JAX reference (lax.scan) mirroring nn.LSTM semantics, for correctness check."""
    x = jnp.transpose(x_btd, (1, 0, 2)).astype(jnp.float32)  # (T, B, D)
    B = x.shape[1]
    H = hidden_size
    h_list, c_list = [], []
    for (w_ihT, w_hhT, b) in params:
        def step(carry, x_t):
            h, c = carry
            gates = x_t @ w_ihT + h @ w_hhT + b
            i = jax.nn.sigmoid(gates[:, 0 * H:1 * H])
            f = jax.nn.sigmoid(gates[:, 1 * H:2 * H])
            g = jnp.tanh(gates[:, 2 * H:3 * H])
            o = jax.nn.sigmoid(gates[:, 3 * H:4 * H])
            c_new = f * c + i * g
            h_new = o * jnp.tanh(c_new)
            return (h_new, c_new), h_new

        init = (jnp.zeros((B, H), jnp.float32), jnp.zeros((B, H), jnp.float32))
        (h_T, c_T), y = jax.lax.scan(step, init, x)
        h_list.append(h_T)
        c_list.append(c_T)
        x = y
    return jnp.stack(h_list, 0), jnp.stack(c_list, 0)


if __name__ == "__main__":
    # Small shapes consistent with the module: batch=2, seq=8, input_size=16, hidden=32, 2 layers.
    B, T, D_IN, H, L = 2, 8, 16, 32, 2

    key = jax.random.PRNGKey(0)
    key, xkey, pkey = jax.random.split(key, 3)
    x = jax.random.normal(xkey, (B, T, D_IN), jnp.float32)  # (batch, seq, feature), batch_first=True

    model = EncoderLSTMPallas(input_size=D_IN, hidden_size=H, batch_first=True,
                              num_layers=L, dropout=0.0, key=pkey)

    h_n, c_n = model(x)
    h_n = jax.block_until_ready(h_n)
    c_n = jax.block_until_ready(c_n)

    assert h_n.shape == (L, B, H) and c_n.shape == (L, B, H)

    # Sanity check against a pure-JAX reference (unfused/unscaled weights, lax.scan recurrence).
    # Tolerance slightly relaxed vs pure f32: the kernel evaluates the g gate as
    # 2*sigmoid(2x) - 1 (== tanh(x)) and splits the matmul sum order, both ulp-level deltas.
    h_ref, c_ref = _reference_lstm(x, model.ref_params, H)
    assert jnp.allclose(h_n, h_ref, atol=5e-4, rtol=5e-4), float(jnp.max(jnp.abs(h_n - h_ref)))
    assert jnp.allclose(c_n, c_ref, atol=5e-4, rtol=5e-4), float(jnp.max(jnp.abs(c_n - c_ref)))

    print("KERNEL_OK")
</pallas_src>

<mosaic_0001>
module attributes {stable_mosaic.version = 11 : i64} {
  func.func @_encoder_lstm_kernel(%arg0: i32, %arg1: memref<8x2x16xf32, #tpu.memory_space<vmem>>, %arg2: memref<1x32x128xf32, #tpu.memory_space<vmem>>, %arg3: memref<1x32x128xf32, #tpu.memory_space<vmem>>, %arg4: memref<1x1x128xf32, #tpu.memory_space<vmem>>, %arg5: memref<1x2x32xf32, #tpu.memory_space<vmem>>, %arg6: memref<1x2x32xf32, #tpu.memory_space<vmem>>, %arg7: memref<8x2x32xf32, #tpu.memory_space<vmem>>, %arg8: memref<8x2x128xf32, #tpu.memory_space<vmem>>) attributes {dimension_semantics = [#tpu.dimension_semantics<arbitrary>], iteration_bounds = array<i64: 2>, scalar_prefetch = 0 : i64, scratch_operands = 2 : i64, tpu.core_type = #tpu.core_type<tc>, window_params = [{pipeline_mode = #tpu.pipeline_mode<synchronous>, transform_indices = @transform_0, window_bounds = array<i64: 8, 2, 16>}, {transform_indices = @transform_1, window_bounds = array<i64: 1, 32, 128>}, {transform_indices = @transform_2, window_bounds = array<i64: 1, 32, 128>}, {transform_indices = @transform_3, window_bounds = array<i64: 1, 1, 128>}, {transform_indices = @transform_4, window_bounds = array<i64: 1, 2, 32>}, {transform_indices = @transform_5, window_bounds = array<i64: 1, 2, 32>}]} {
    %c0 = arith.constant 0 : index
    %c0_0 = arith.constant 0 : index
    %c0_1 = arith.constant 0 : index
    %0 = vector.load %arg4[%c0, %c0_0, %c0_1] : memref<1x1x128xf32, #tpu.memory_space<vmem>>, vector<1x1x128xf32>
    %1 = vector.shape_cast %0 : vector<1x1x128xf32> to vector<1x128xf32>
    %c0_i32 = arith.constant 0 : i32
    %2 = arith.cmpi eq, %arg0, %c0_i32 : i32
    %3 = arith.extui %2 : i1 to i32
    %c0_i32_2 = arith.constant 0 : i32
    %4 = arith.cmpi ne, %3, %c0_i32_2 : i32
    scf.if %4 {
      %c0_80 = arith.constant 0 : index
      %c0_81 = arith.constant 0 : index
      %c0_82 = arith.constant 0 : index
      %234 = vector.load %arg1[%c0_80, %c0_81, %c0_82] : memref<8x2x16xf32, #tpu.memory_space<vmem>>, vector<8x2x16xf32>
      %235 = vector.shape_cast %234 : vector<8x2x16xf32> to vector<16x16xf32>
      %c0_83 = arith.constant 0 : index
      %c0_84 = arith.constant 0 : index
      %c0_85 = arith.constant 0 : index
      %236 = vector.load %arg2[%c0_83, %c0_84, %c0_85] : memref<1x32x128xf32, #tpu.memory_space<vmem>>, vector<1x16x128xf32>
      %237 = vector.shape_cast %236 : vector<1x16x128xf32> to vector<16x128xf32>
      %cst_86 = arith.constant dense<0.000000e+00> : vector<16x128xf32>
      %238 = tpu.matmul %235, %237, %cst_86 {dimension_numbers = #tpu.dot_dimension_numbers<[1], [0], [0], [1], [0, 0, 1, 1], [], []>} : vector<16x16xf32>, vector<16x128xf32>, vector<16x128xf32> -> vector<16x128xf32>
      %239 = vector.broadcast %1 : vector<1x128xf32> to vector<16x128xf32>
      %240 = arith.addf %238, %239 : vector<16x128xf32>
      %241 = vector.shape_cast %240 : vector<16x128xf32> to vector<8x2x128xf32>
      %c0_87 = arith.constant 0 : index
      %c0_88 = arith.constant 0 : index
      %c0_89 = arith.constant 0 : index
      %242 = vector.load %arg8[%c0_87, %c0_88, %c0_89] : memref<8x2x128xf32, #tpu.memory_space<vmem>>, vector<8x2x128xf32>
      tpu.vector_store %arg8[%c0_87, %c0_88, %c0_89], %241 {strides = array<i32>} : memref<8x2x128xf32, #tpu.memory_space<vmem>>, vector<8x2x128xf32>,
    } else {
    }
    %c0_i32_3 = arith.constant 0 : i32
    %5 = arith.cmpi ne, %arg0, %c0_i32_3 : i32
    %6 = arith.extui %5 : i1 to i32
    %c0_i32_4 = arith.constant 0 : i32
    %7 = arith.cmpi ne, %6, %c0_i32_4 : i32
    scf.if %7 {
      %c0_80 = arith.constant 0 : index
      %c0_81 = arith.constant 0 : index
      %c0_82 = arith.constant 0 : index
      %234 = vector.load %arg7[%c0_80, %c0_81, %c0_82] : memref<8x2x32xf32, #tpu.memory_space<vmem>>, vector<8x2x32xf32>
      %235 = vector.shape_cast %234 : vector<8x2x32xf32> to vector<16x32xf32>
      %c0_83 = arith.constant 0 : index
      %c0_84 = arith.constant 0 : index
      %c0_85 = arith.constant 0 : index
      %236 = vector.load %arg2[%c0_83, %c0_84, %c0_85] : memref<1x32x128xf32, #tpu.memory_space<vmem>>, vector<1x32x128xf32>
      %237 = vector.shape_cast %236 : vector<1x32x128xf32> to vector<32x128xf32>
      %cst_86 = arith.constant dense<0.000000e+00> : vector<16x128xf32>
      %238 = tpu.matmul %235, %237, %cst_86 {dimension_numbers = #tpu.dot_dimension_numbers<[1], [0], [0], [1], [0, 0, 1, 1], [], []>} : vector<16x32xf32>, vector<32x128xf32>, vector<16x128xf32> -> vector<16x128xf32>
      %239 = vector.broadcast %1 : vector<1x128xf32> to vector<16x128xf32>
      %240 = arith.addf %238, %239 : vector<16x128xf32>
      %241 = vector.shape_cast %240 : vector<16x128xf32> to vector<8x2x128xf32>
      %c0_87 = arith.constant 0 : index
      %c0_88 = arith.constant 0 : index
      %c0_89 = arith.constant 0 : index
      %242 = vector.load %arg8[%c0_87, %c0_88, %c0_89] : memref<8x2x128xf32, #tpu.memory_space<vmem>>, vector<8x2x128xf32>
      tpu.vector_store %arg8[%c0_87, %c0_88, %c0_89], %241 {strides = array<i32>} : memref<8x2x128xf32, #tpu.memory_space<vmem>>, vector<8x2x128xf32>,
    } else {
    }
    %c0_5 = arith.constant 0 : index
    %c0_6 = arith.constant 0 : index
    %c0_7 = arith.constant 0 : index
    %8 = vector.load %arg3[%c0_5, %c0_6, %c0_7] : memref<1x32x128xf32, #tpu.memory_space<vmem>>, vector<1x32x128xf32>
    %9 = vector.shape_cast %8 : vector<1x32x128xf32> to vector<32x128xf32>
    %cst = arith.constant 0.000000e+00 : f32
    %10 = vector.broadcast %cst : f32 to vector<2x32xf32>
    %cst_8 = arith.constant 0.000000e+00 : f32
    %11 = vector.broadcast %cst_8 : f32 to vector<2x32xf32>
    %c0_i32_9 = arith.constant 0 : i32
    %12 = arith.index_cast %c0_i32_9 : i32 to index
    %c0_10 = arith.constant 0 : index
    %c0_11 = arith.constant 0 : index
    %13 = vector.load %arg8[%12, %c0_10, %c0_11] : memref<8x2x128xf32, #tpu.memory_space<vmem>>, vector<1x2x128xf32>
    %14 = vector.shape_cast %13 : vector<1x2x128xf32> to vector<2x128xf32>
    %cst_12 = arith.constant dense<0.000000e+00> : vector<2x128xf32>
    %15 = tpu.matmul %10, %9, %cst_12 {dimension_numbers = #tpu.dot_dimension_numbers<[1], [0], [0], [1], [0, 0, 1, 1], [], []>} : vector<2x32xf32>, vector<32x128xf32>, vector<2x128xf32> -> vector<2x128xf32>
    %16 = arith.addf %14, %15 : vector<2x128xf32>
    %17 = arith.negf %16 : vector<2x128xf32>
    %18 = math.exp %17 : vector<2x128xf32>
    %cst_13 = arith.constant 1.000000e+00 : f32
    %19 = vector.broadcast %cst_13 : f32 to vector<2x128xf32>
    %20 = arith.addf %19, %18 : vector<2x128xf32>
    %21 = arith.divf %19, %20 : vector<2x128xf32>
    %22 = vector.extract_strided_slice %21 {offsets = [0, 0], sizes = [2, 32], strides = [1, 1]} : vector<2x128xf32> to vector<2x32xf32>
    %23 = vector.extract_strided_slice %21 {offsets = [0, 32], sizes = [2, 32], strides = [1, 1]} : vector<2x128xf32> to vector<2x32xf32>
    %24 = vector.extract_strided_slice %21 {offsets = [0, 64], sizes = [2, 32], strides = [1, 1]} : vector<2x128xf32> to vector<2x32xf32>
    %cst_14 = arith.constant 2.000000e+00 : f32
    %25 = vector.broadcast %cst_14 : f32 to vector<2x32xf32>
    %26 = arith.mulf %25, %24 : vector<2x32xf32>
    %cst_15 = arith.constant 1.000000e+00 : f32
    %27 = vector.broadcast %cst_15 : f32 to vector<2x32xf32>
    %28 = arith.subf %26, %27 : vector<2x32xf32>
    %29 = vector.extract_strided_slice %21 {offsets = [0, 96], sizes = [2, 32], strides = [1, 1]} : vector<2x128xf32> to vector<2x32xf32>
    %30 = arith.mulf %23, %11 : vector<2x32xf32>
    %31 = arith.mulf %22, %28 : vector<2x32xf32>
    %32 = arith.addf %30, %31 : vector<2x32xf32>
    %33 = math.tanh %32 : vector<2x32xf32>
    %34 = arith.mulf %29, %33 : vector<2x32xf32>
    %35 = arith.index_cast %c0_i32_9 : i32 to index
    %c0_16 = arith.constant 0 : index
    %c0_17 = arith.constant 0 : index
    %36 = vector.load %arg7[%35, %c0_16, %c0_17] : memref<8x2x32xf32, #tpu.memory_space<vmem>>, vector<1x2x32xf32>
    %37 = vector.shape_cast %36 : vector<1x2x32xf32> to vector<2x32xf32>
    %38 = vector.shape_cast %34 : vector<2x32xf32> to vector<1x2x32xf32>
    tpu.vector_store %arg7[%35, %c0_16, %c0_17], %38 {strides = array<i32>} : memref<8x2x32xf32, #tpu.memory_space<vmem>>, vector<1x2x32xf32>,
    %c1_i32 = arith.constant 1 : i32
    %39 = arith.index_cast %c1_i32 : i32 to index
    %c0_18 = arith.constant 0 : index
    %c0_19 = arith.constant 0 : index
    %40 = vector.load %arg8[%39, %c0_18, %c0_19] : memref<8x2x128xf32, #tpu.memory_space<vmem>>, vector<1x2x128xf32>
    %41 = vector.shape_cast %40 : vector<1x2x128xf32> to vector<2x128xf32>
    %cst_20 = arith.constant dense<0.000000e+00> : vector<2x128xf32>
    %42 = tpu.matmul %34, %9, %cst_20 {dimension_numbers = #tpu.dot_dimension_numbers<[1], [0], [0], [1], [0, 0, 1, 1], [], []>} : vector<2x32xf32>, vector<32x128xf32>, vector<2x128xf32> -> vector<2x128xf32>
    %43 = arith.addf %41, %42 : vector<2x128xf32>
    %44 = arith.negf %43 : vector<2x128xf32>
    %45 = math.exp %44 : vector<2x128xf32>
    %cst_21 = arith.constant 1.000000e+00 : f32
    %46 = vector.broadcast %cst_21 : f32 to vector<2x128xf32>
    %47 = arith.addf %46, %45 : vector<2x128xf32>
    %48 = arith.divf %46, %47 : vector<2x128xf32>
    %49 = vector.extract_strided_slice %48 {offsets = [0, 0], sizes = [2, 32], strides = [1, 1]} : vector<2x128xf32> to vector<2x32xf32>
    %50 = vector.extract_strided_slice %48 {offsets = [0, 32], sizes = [2, 32], strides = [1, 1]} : vector<2x128xf32> to vector<2x32xf32>
    %51 = vector.extract_strided_slice %48 {offsets = [0, 64], sizes = [2, 32], strides = [1, 1]} : vector<2x128xf32> to vector<2x32xf32>
    %cst_22 = arith.constant 2.000000e+00 : f32
    %52 = vector.broadcast %cst_22 : f32 to vector<2x32xf32>
    %53 = arith.mulf %52, %51 : vector<2x32xf32>
    %cst_23 = arith.constant 1.000000e+00 : f32
    %54 = vector.broadcast %cst_23 : f32 to vector<2x32xf32>
    %55 = arith.subf %53, %54 : vector<2x32xf32>
    %56 = vector.extract_strided_slice %48 {offsets = [0, 96], sizes = [2, 32], strides = [1, 1]} : vector<2x128xf32> to vector<2x32xf32>
    %57 = arith.mulf %50, %32 : vector<2x32xf32>
    %58 = arith.mulf %49, %55 : vector<2x32xf32>
    %59 = arith.addf %57, %58 : vector<2x32xf32>
    %60 = math.tanh %59 : vector<2x32xf32>
    %61 = arith.mulf %56, %60 : vector<2x32xf32>
    %62 = arith.index_cast %c1_i32 : i32 to index
    %c0_24 = arith.constant 0 : index
    %c0_25 = arith.constant 0 : index
    %63 = vector.load %arg7[%62, %c0_24, %c0_25] : memref<8x2x32xf32, #tpu.memory_space<vmem>>, vector<1x2x32xf32>
    %64 = vector.shape_cast %63 : vector<1x2x32xf32> to vector<2x32xf32>
    %65 = vector.shape_cast %61 : vector<2x32xf32> to vector<1x2x32xf32>
    tpu.vector_store %arg7[%62, %c0_24, %c0_25], %65 {strides = array<i32>} : memref<8x2x32xf32, #tpu.memory_space<vmem>>, vector<1x2x32xf32>,
    %c2_i32 = arith.constant 2 : i32
    %66 = arith.index_cast %c2_i32 : i32 to index
    %c0_26 = arith.constant 0 : index
    %c0_27 = arith.constant 0 : index
    %67 = vector.load %arg8[%66, %c0_26, %c0_27] : memref<8x2x128xf32, #tpu.memory_space<vmem>>, vector<1x2x128xf32>
    %68 = vector.shape_cast %67 : vector<1x2x128xf32> to vector<2x128xf32>
    %cst_28 = arith.constant dense<0.000000e+00> : vector<2x128xf32>
    %69 = tpu.matmul %61, %9, %cst_28 {dimension_numbers = #tpu.dot_dimension_numbers<[1], [0], [0], [1], [0, 0, 1, 1], [], []>} : vector<2x32xf32>, vector<32x128xf32>, vector<2x128xf32> -> vector<2x128xf32>
    %70 = arith.addf %68, %69 : vector<2x128xf32>
    %71 = arith.negf %70 : vector<2x128xf32>
    %72 = math.exp %71 : vector<2x128xf32>
    %cst_29 = arith.constant 1.000000e+00 : f32
    %73 = vector.broadcast %cst_29 : f32 to vector<2x128xf32>
    %74 = arith.addf %73, %72 : vector<2x128xf32>
    %75 = arith.divf %73, %74 : vector<2x128xf32>
    %76 = vector.extract_strided_slice %75 {offsets = [0, 0], sizes = [2, 32], strides = [1, 1]} : vector<2x128xf32> to vector<2x32xf32>
    %77 = vector.extract_strided_slice %75 {offsets = [0, 32], sizes = [2, 32], strides = [1, 1]} : vector<2x128xf32> to vector<2x32xf32>
    %78 = vector.extract_strided_slice %75 {offsets = [0, 64], sizes = [2, 32], strides = [1, 1]} : vector<2x128xf32> to vector<2x32xf32>
    %cst_30 = arith.constant 2.000000e+00 : f32
    %79 = vector.broadcast %cst_30 : f32 to vector<2x32xf32>
    %80 = arith.mulf %79, %78 : vector<2x32xf32>
    %cst_31 = arith.constant 1.000000e+00 : f32
    %81 = vector.broadcast %cst_31 : f32 to vector<2x32xf32>
    %82 = arith.subf %80, %81 : vector<2x32xf32>
    %83 = vector.extract_strided_slice %75 {offsets = [0, 96], sizes = [2, 32], strides = [1, 1]} : vector<2x128xf32> to vector<2x32xf32>
    %84 = arith.mulf %77, %59 : vector<2x32xf32>
    %85 = arith.mulf %76, %82 : vector<2x32xf32>
    %86 = arith.addf %84, %85 : vector<2x32xf32>
    %87 = math.tanh %86 : vector<2x32xf32>
    %88 = arith.mulf %83, %87 : vector<2x32xf32>
    %89 = arith.index_cast %c2_i32 : i32 to index
    %c0_32 = arith.constant 0 : index
    %c0_33 = arith.constant 0 : index
    %90 = vector.load %arg7[%89, %c0_32, %c0_33] : memref<8x2x32xf32, #tpu.memory_space<vmem>>, vector<1x2x32xf32>
    %91 = vector.shape_cast %90 : vector<1x2x32xf32> to vector<2x32xf32>
    %92 = vector.shape_cast %88 : vector<2x32xf32> to vector<1x2x32xf32>
    tpu.vector_store %arg7[%89, %c0_32, %c0_33], %92 {strides = array<i32>} : memref<8x2x32xf32, #tpu.memory_space<vmem>>, vector<1x2x32xf32>,
    %c3_i32 = arith.constant 3 : i32
    %93 = arith.index_cast %c3_i32 : i32 to index
    %c0_34 = arith.constant 0 : index
    %c0_35 = arith.constant 0 : index
    %94 = vector.load %arg8[%93, %c0_34, %c0_35] : memref<8x2x128xf32, #tpu.memory_space<vmem>>, vector<1x2x128xf32>
    %95 = vector.shape_cast %94 : vector<1x2x128xf32> to vector<2x128xf32>
    %cst_36 = arith.constant dense<0.000000e+00> : vector<2x128xf32>
    %96 = tpu.matmul %88, %9, %cst_36 {dimension_numbers = #tpu.dot_dimension_numbers<[1], [0], [0], [1], [0, 0, 1, 1], [], []>} : vector<2x32xf32>, vector<32x128xf32>, vector<2x128xf32> -> vector<2x128xf32>
    %97 = arith.addf %95, %96 : vector<2x128xf32>
    %98 = arith.negf %97 : vector<2x128xf32>
    %99 = math.exp %98 : vector<2x128xf32>
    %cst_37 = arith.constant 1.000000e+00 : f32
    %100 = vector.broadcast %cst_37 : f32 to vector<2x128xf32>
    %101 = arith.addf %100, %99 : vector<2x128xf32>
    %102 = arith.divf %100, %101 : vector<2x128xf32>
    %103 = vector.extract_strided_slice %102 {offsets = [0, 0], sizes = [2, 32], strides = [1, 1]} : vector<2x128xf32> to vector<2x32xf32>
    %104 = vector.extract_strided_slice %102 {offsets = [0, 32], sizes = [2, 32], strides = [1, 1]} : vector<2x128xf32> to vector<2x32xf32>
    %105 = vector.extract_strided_slice %102 {offsets = [0, 64], sizes = [2, 32], strides = [1, 1]} : vector<2x128xf32> to vector<2x32xf32>
    %cst_38 = arith.constant 2.000000e+00 : f32
    %106 = vector.broadcast %cst_38 : f32 to vector<2x32xf32>
    %107 = arith.mulf %106, %105 : vector<2x32xf32>
    %cst_39 = arith.constant 1.000000e+00 : f32
    %108 = vector.broadcast %cst_39 : f32 to vector<2x32xf32>
    %109 = arith.subf %107, %108 : vector<2x32xf32>
    %110 = vector.extract_strided_slice %102 {offsets = [0, 96], sizes = [2, 32], strides = [1, 1]} : vector<2x128xf32> to vector<2x32xf32>
    %111 = arith.mulf %104, %86 : vector<2x32xf32>
    %112 = arith.mulf %103, %109 : vector<2x32xf32>
    %113 = arith.addf %111, %112 : vector<2x32xf32>
    %114 = math.tanh %113 : vector<2x32xf32>
    %115 = arith.mulf %110, %114 : vector<2x32xf32>
    %116 = arith.index_cast %c3_i32 : i32 to index
    %c0_40 = arith.constant 0 : index
    %c0_41 = arith.constant 0 : index
    %117 = vector.load %arg7[%116, %c0_40, %c0_41] : memref<8x2x32xf32, #tpu.memory_space<vmem>>, vector<1x2x32xf32>
    %118 = vector.shape_cast %117 : vector<1x2x32xf32> to vector<2x32xf32>
    %119 = vector.shape_cast %115 : vector<2x32xf32> to vector<1x2x32xf32>
    tpu.vector_store %arg7[%116, %c0_40, %c0_41], %119 {strides = array<i32>} : memref<8x2x32xf32, #tpu.memory_space<vmem>>, vector<1x2x32xf32>,
    %c4_i32 = arith.constant 4 : i32
    %120 = arith.index_cast %c4_i32 : i32 to index
    %c0_42 = arith.constant 0 : index
    %c0_43 = arith.constant 0 : index
    %121 = vector.load %arg8[%120, %c0_42, %c0_43] : memref<8x2x128xf32, #tpu.memory_space<vmem>>, vector<1x2x128xf32>
    %122 = vector.shape_cast %121 : vector<1x2x128xf32> to vector<2x128xf32>
    %cst_44 = arith.constant dense<0.000000e+00> : vector<2x128xf32>
    %123 = tpu.matmul %115, %9, %cst_44 {dimension_numbers = #tpu.dot_dimension_numbers<[1], [0], [0], [1], [0, 0, 1, 1], [], []>} : vector<2x32xf32>, vector<32x128xf32>, vector<2x128xf32> -> vector<2x128xf32>
    %124 = arith.addf %122, %123 : vector<2x128xf32>
    %125 = arith.negf %124 : vector<2x128xf32>
    %126 = math.exp %125 : vector<2x128xf32>
    %cst_45 = arith.constant 1.000000e+00 : f32
    %127 = vector.broadcast %cst_45 : f32 to vector<2x128xf32>
    %128 = arith.addf %127, %126 : vector<2x128xf32>
    %129 = arith.divf %127, %128 : vector<2x128xf32>
    %130 = vector.extract_strided_slice %129 {offsets = [0, 0], sizes = [2, 32], strides = [1, 1]} : vector<2x128xf32> to vector<2x32xf32>
    %131 = vector.extract_strided_slice %129 {offsets = [0, 32], sizes = [2, 32], strides = [1, 1]} : vector<2x128xf32> to vector<2x32xf32>
    %132 = vector.extract_strided_slice %129 {offsets = [0, 64], sizes = [2, 32], strides = [1, 1]} : vector<2x128xf32> to vector<2x32xf32>
    %cst_46 = arith.constant 2.000000e+00 : f32
    %133 = vector.broadcast %cst_46 : f32 to vector<2x32xf32>
    %134 = arith.mulf %133, %132 : vector<2x32xf32>
    %cst_47 = arith.constant 1.000000e+00 : f32
    %135 = vector.broadcast %cst_47 : f32 to vector<2x32xf32>
    %136 = arith.subf %134, %135 : vector<2x32xf32>
    %137 = vector.extract_strided_slice %129 {offsets = [0, 96], sizes = [2, 32], strides = [1, 1]} : vector<2x128xf32> to vector<2x32xf32>
    %138 = arith.mulf %131, %113 : vector<2x32xf32>
    %139 = arith.mulf %130, %136 : vector<2x32xf32>
    %140 = arith.addf %138, %139 : vector<2x32xf32>
    %141 = math.tanh %140 : vector<2x32xf32>
    %142 = arith.mulf %137, %141 : vector<2x32xf32>
    %143 = arith.index_cast %c4_i32 : i32 to index
    %c0_48 = arith.constant 0 : index
    %c0_49 = arith.constant 0 : index
    %144 = vector.load %arg7[%143, %c0_48, %c0_49] : memref<8x2x32xf32, #tpu.memory_space<vmem>>, vector<1x2x32xf32>
    %145 = vector.shape_cast %144 : vector<1x2x32xf32> to vector<2x32xf32>
    %146 = vector.shape_cast %142 : vector<2x32xf32> to vector<1x2x32xf32>
    tpu.vector_store %arg7[%143, %c0_48, %c0_49], %146 {strides = array<i32>} : memref<8x2x32xf32, #tpu.memory_space<vmem>>, vector<1x2x32xf32>,
    %c5_i32 = arith.constant 5 : i32
    %147 = arith.index_cast %c5_i32 : i32 to index
    %c0_50 = arith.constant 0 : index
    %c0_51 = arith.constant 0 : index
    %148 = vector.load %arg8[%147, %c0_50, %c0_51] : memref<8x2x128xf32, #tpu.memory_space<vmem>>, vector<1x2x128xf32>
    %149 = vector.shape_cast %148 : vector<1x2x128xf32> to vector<2x128xf32>
    %cst_52 = arith.constant dense<0.000000e+00> : vector<2x128xf32>
    %150 = tpu.matmul %142, %9, %cst_52 {dimension_numbers = #tpu.dot_dimension_numbers<[1], [0], [0], [1], [0, 0, 1, 1], [], []>} : vector<2x32xf32>, vector<32x128xf32>, vector<2x128xf32> -> vector<2x128xf32>
    %151 = arith.addf %149, %150 : vector<2x128xf32>
    %152 = arith.negf %151 : vector<2x128xf32>
    %153 = math.exp %152 : vector<2x128xf32>
    %cst_53 = arith.constant 1.000000e+00 : f32
    %154 = vector.broadcast %cst_53 : f32 to vector<2x128xf32>
    %155 = arith.addf %154, %153 : vector<2x128xf32>
    %156 = arith.divf %154, %155 : vector<2x128xf32>
    %157 = vector.extract_strided_slice %156 {offsets = [0, 0], sizes = [2, 32], strides = [1, 1]} : vector<2x128xf32> to vector<2x32xf32>
    %158 = vector.extract_strided_slice %156 {offsets = [0, 32], sizes = [2, 32], strides = [1, 1]} : vector<2x128xf32> to vector<2x32xf32>
    %159 = vector.extract_strided_slice %156 {offsets = [0, 64], sizes = [2, 32], strides = [1, 1]} : vector<2x128xf32> to vector<2x32xf32>
    %cst_54 = arith.constant 2.000000e+00 : f32
    %160 = vector.broadcast %cst_54 : f32 to vector<2x32xf32>
    %161 = arith.mulf %160, %159 : vector<2x32xf32>
    %cst_55 = arith.constant 1.000000e+00 : f32
    %162 = vector.broadcast %cst_55 : f32 to vector<2x32xf32>
    %163 = arith.subf %161, %162 : vector<2x32xf32>
    %164 = vector.extract_strided_slice %156 {offsets = [0, 96], sizes = [2, 32], strides = [1, 1]} : vector<2x128xf32> to vector<2x32xf32>
    %165 = arith.mulf %158, %140 : vector<2x32xf32>
    %166 = arith.mulf %157, %163 : vector<2x32xf32>
    %167 = arith.addf %165, %166 : vector<2x32xf32>
    %168 = math.tanh %167 : vector<2x32xf32>
    %169 = arith.mulf %164, %168 : vector<2x32xf32>
    %170 = arith.index_cast %c5_i32 : i32 to index
    %c0_56 = arith.constant 0 : index
    %c0_57 = arith.constant 0 : index
    %171 = vector.load %arg7[%170, %c0_56, %c0_57] : memref<8x2x32xf32, #tpu.memory_space<vmem>>, vector<1x2x32xf32>
    %172 = vector.shape_cast %171 : vector<1x2x32xf32> to vector<2x32xf32>
    %173 = vector.shape_cast %169 : vector<2x32xf32> to vector<1x2x32xf32>
    tpu.vector_store %arg7[%170, %c0_56, %c0_57], %173 {strides = array<i32>} : memref<8x2x32xf32, #tpu.memory_space<vmem>>, vector<1x2x32xf32>,
    %c6_i32 = arith.constant 6 : i32
    %174 = arith.index_cast %c6_i32 : i32 to index
    %c0_58 = arith.constant 0 : index
    %c0_59 = arith.constant 0 : index
    %175 = vector.load %arg8[%174, %c0_58, %c0_59] : memref<8x2x128xf32, #tpu.memory_space<vmem>>, vector<1x2x128xf32>
    %176 = vector.shape_cast %175 : vector<1x2x128xf32> to vector<2x128xf32>
    %cst_60 = arith.constant dense<0.000000e+00> : vector<2x128xf32>
    %177 = tpu.matmul %169, %9, %cst_60 {dimension_numbers = #tpu.dot_dimension_numbers<[1], [0], [0], [1], [0, 0, 1, 1], [], []>} : vector<2x32xf32>, vector<32x128xf32>, vector<2x128xf32> -> vector<2x128xf32>
    %178 = arith.addf %176, %177 : vector<2x128xf32>
    %179 = arith.negf %178 : vector<2x128xf32>
    %180 = math.exp %179 : vector<2x128xf32>
    %cst_61 = arith.constant 1.000000e+00 : f32
    %181 = vector.broadcast %cst_61 : f32 to vector<2x128xf32>
    %182 = arith.addf %181, %180 : vector<2x128xf32>
    %183 = arith.divf %181, %182 : vector<2x128xf32>
    %184 = vector.extract_strided_slice %183 {offsets = [0, 0], sizes = [2, 32], strides = [1, 1]} : vector<2x128xf32> to vector<2x32xf32>
    %185 = vector.extract_strided_slice %183 {offsets = [0, 32], sizes = [2, 32], strides = [1, 1]} : vector<2x128xf32> to vector<2x32xf32>
    %186 = vector.extract_strided_slice %183 {offsets = [0, 64], sizes = [2, 32], strides = [1, 1]} : vector<2x128xf32> to vector<2x32xf32>
    %cst_62 = arith.constant 2.000000e+00 : f32
    %187 = vector.broadcast %cst_62 : f32 to vector<2x32xf32>
    %188 = arith.mulf %187, %186 : vector<2x32xf32>
    %cst_63 = arith.constant 1.000000e+00 : f32
    %189 = vector.broadcast %cst_63 : f32 to vector<2x32xf32>
    %190 = arith.subf %188, %189 : vector<2x32xf32>
    %191 = vector.extract_strided_slice %183 {offsets = [0, 96], sizes = [2, 32], strides = [1, 1]} : vector<2x128xf32> to vector<2x32xf32>
    %192 = arith.mulf %185, %167 : vector<2x32xf32>
    %193 = arith.mulf %184, %190 : vector<2x32xf32>
    %194 = arith.addf %192, %193 : vector<2x32xf32>
    %195 = math.tanh %194 : vector<2x32xf32>
    %196 = arith.mulf %191, %195 : vector<2x32xf32>
    %197 = arith.index_cast %c6_i32 : i32 to index
    %c0_64 = arith.constant 0 : index
    %c0_65 = arith.constant 0 : index
    %198 = vector.load %arg7[%197, %c0_64, %c0_65] : memref<8x2x32xf32, #tpu.memory_space<vmem>>, vector<1x2x32xf32>
    %199 = vector.shape_cast %198 : vector<1x2x32xf32> to vector<2x32xf32>
    %200 = vector.shape_cast %196 : vector<2x32xf32> to vector<1x2x32xf32>
    tpu.vector_store %arg7[%197, %c0_64, %c0_65], %200 {strides = array<i32>} : memref<8x2x32xf32, #tpu.memory_space<vmem>>, vector<1x2x32xf32>,
    %c7_i32 = arith.constant 7 : i32
    %201 = arith.index_cast %c7_i32 : i32 to index
    %c0_66 = arith.constant 0 : index
    %c0_67 = arith.constant 0 : index
    %202 = vector.load %arg8[%201, %c0_66, %c0_67] : memref<8x2x128xf32, #tpu.memory_space<vmem>>, vector<1x2x128xf32>
    %203 = vector.shape_cast %202 : vector<1x2x128xf32> to vector<2x128xf32>
    %cst_68 = arith.constant dense<0.000000e+00> : vector<2x128xf32>
    %204 = tpu.matmul %196, %9, %cst_68 {dimension_numbers = #tpu.dot_dimension_numbers<[1], [0], [0], [1], [0, 0, 1, 1], [], []>} : vector<2x32xf32>, vector<32x128xf32>, vector<2x128xf32> -> vector<2x128xf32>
    %205 = arith.addf %203, %204 : vector<2x128xf32>
    %206 = arith.negf %205 : vector<2x128xf32>
    %207 = math.exp %206 : vector<2x128xf32>
    %cst_69 = arith.constant 1.000000e+00 : f32
    %208 = vector.broadcast %cst_69 : f32 to vector<2x128xf32>
    %209 = arith.addf %208, %207 : vector<2x128xf32>
    %210 = arith.divf %208, %209 : vector<2x128xf32>
    %211 = vector.extract_strided_slice %210 {offsets = [0, 0], sizes = [2, 32], strides = [1, 1]} : vector<2x128xf32> to vector<2x32xf32>
    %212 = vector.extract_strided_slice %210 {offsets = [0, 32], sizes = [2, 32], strides = [1, 1]} : vector<2x128xf32> to vector<2x32xf32>
    %213 = vector.extract_strided_slice %210 {offsets = [0, 64], sizes = [2, 32], strides = [1, 1]} : vector<2x128xf32> to vector<2x32xf32>
    %cst_70 = arith.constant 2.000000e+00 : f32
    %214 = vector.broadcast %cst_70 : f32 to vector<2x32xf32>
    %215 = arith.mulf %214, %213 : vector<2x32xf32>
    %cst_71 = arith.constant 1.000000e+00 : f32
    %216 = vector.broadcast %cst_71 : f32 to vector<2x32xf32>
    %217 = arith.subf %215, %216 : vector<2x32xf32>
    %218 = vector.extract_strided_slice %210 {offsets = [0, 96], sizes = [2, 32], strides = [1, 1]} : vector<2x128xf32> to vector<2x32xf32>
    %219 = arith.mulf %212, %194 : vector<2x32xf32>
    %220 = arith.mulf %211, %217 : vector<2x32xf32>
    %221 = arith.addf %219, %220 : vector<2x32xf32>
    %222 = math.tanh %221 : vector<2x32xf32>
    %223 = arith.mulf %218, %222 : vector<2x32xf32>
    %224 = arith.index_cast %c7_i32 : i32 to index
    %c0_72 = arith.constant 0 : index
    %c0_73 = arith.constant 0 : index
    %225 = vector.load %arg7[%224, %c0_72, %c0_73] : memref<8x2x32xf32, #tpu.memory_space<vmem>>, vector<1x2x32xf32>
    %226 = vector.shape_cast %225 : vector<1x2x32xf32> to vector<2x32xf32>
    %227 = vector.shape_cast %223 : vector<2x32xf32> to vector<1x2x32xf32>
    tpu.vector_store %arg7[%224, %c0_72, %c0_73], %227 {strides = array<i32>} : memref<8x2x32xf32, #tpu.memory_space<vmem>>, vector<1x2x32xf32>,
    %c8_i32 = arith.constant 8 : i32
    %c0_74 = arith.constant 0 : index
    %c0_75 = arith.constant 0 : index
    %c0_76 = arith.constant 0 : index
    %228 = vector.load %arg5[%c0_74, %c0_75, %c0_76] : memref<1x2x32xf32, #tpu.memory_space<vmem>>, vector<1x2x32xf32>
    %229 = vector.shape_cast %228 : vector<1x2x32xf32> to vector<2x32xf32>
    %230 = vector.shape_cast %223 : vector<2x32xf32> to vector<1x2x32xf32>
    tpu.vector_store %arg5[%c0_74, %c0_75, %c0_76], %230 {strides = array<i32>} : memref<1x2x32xf32, #tpu.memory_space<vmem>>, vector<1x2x32xf32>,
    %c0_77 = arith.constant 0 : index
    %c0_78 = arith.constant 0 : index
    %c0_79 = arith.constant 0 : index
    %231 = vector.load %arg6[%c0_77, %c0_78, %c0_79] : memref<1x2x32xf32, #tpu.memory_space<vmem>>, vector<1x2x32xf32>
    %232 = vector.shape_cast %231 : vector<1x2x32xf32> to vector<2x32xf32>
    %233 = vector.shape_cast %221 : vector<2x32xf32> to vector<1x2x32xf32>
    tpu.vector_store %arg6[%c0_77, %c0_78, %c0_79], %233 {strides = array<i32>} : memref<1x2x32xf32, #tpu.memory_space<vmem>>, vector<1x2x32xf32>,
    return
  }
  func.func @transform_0(%arg0: i32) -> (i32, i32, i32) {
    %c0_i32 = arith.constant 0 : i32
    %c0_i32_0 = arith.constant 0 : i32
    %c0_i32_1 = arith.constant 0 : i32
    %c0_i32_2 = arith.constant 0 : i32
    return %c0_i32, %c0_i32_0, %c0_i32_1 : i32, i32, i32
  }
  func.func @transform_1(%arg0: i32) -> (i32, i32, i32) {
    %c0_i32 = arith.constant 0 : i32
    %c0_i32_0 = arith.constant 0 : i32
    %c0_i32_1 = arith.constant 0 : i32
    return %arg0, %c0_i32, %c0_i32_0 : i32, i32, i32
  }
  func.func @transform_2(%arg0: i32) -> (i32, i32, i32) {
    %c0_i32 = arith.constant 0 : i32
    %c0_i32_0 = arith.constant 0 : i32
    %c0_i32_1 = arith.constant 0 : i32
    return %arg0, %c0_i32, %c0_i32_0 : i32, i32, i32
  }
  func.func @transform_3(%arg0: i32) -> (i32, i32, i32) {
    %c0_i32 = arith.constant 0 : i32
    %c0_i32_0 = arith.constant 0 : i32
    %c0_i32_1 = arith.constant 0 : i32
    return %arg0, %c0_i32, %c0_i32_0 : i32, i32, i32
  }
  func.func @transform_4(%arg0: i32) -> (i32, i32, i32) {
    %c0_i32 = arith.constant 0 : i32
    %c0_i32_0 = arith.constant 0 : i32
    %c0_i32_1 = arith.constant 0 : i32
    return %arg0, %c0_i32, %c0_i32_0 : i32, i32, i32
  }
  func.func @transform_5(%arg0: i32) -> (i32, i32, i32) {
    %c0_i32 = arith.constant 0 : i32
    %c0_i32_0 = arith.constant 0 : i32
    %c0_i32_1 = arith.constant 0 : i32
    return %arg0, %c0_i32, %c0_i32_0 : i32, i32, i32
  }
}

</mosaic_0001>

<bundles_post_ra>
// kernel: tpu_custom_call.1
= control target key start
LH: loop header
LB: loop body
LE: loop exit
PB: predicated region body
PF: predicated region fallthrough
CT: control target
= control target key end

     0   :  { %11 = vsyncpa [#allocation5], 0  ;;  %s2812_s0 = inlined_call_operand.hbm [shape: f32[8,2,16], index: 0, kind: input, shape index: {}]   ;;  %s2813_s1 = inlined_call_operand.hbm [shape: f32[2,32,128], index: 1, kind: input, shape index: {}]   ;;  %s2814_s2 = inlined_call_operand.hbm [shape: f32[2,32,128], index: 2, kind: input, shape index: {}]   ;;  %s2815_s3 = inlined_call_operand.vmem [shape: f32[2,1,128], index: 3, kind: input, shape index: {}]   ;;  %s2816_s4 = inlined_call_operand.hbm [shape: f32[2,2,32], index: 4, kind: output, shape index: {0}]   ;;  %s2817_s5 = inlined_call_operand.hbm [shape: f32[2,2,32], index: 5, kind: output, shape index: {1}]  }
   0x1   :  { %12 = vsyncpa [#allocation8], 0 }
   0x2   :  { %14 = vsyncpa [#allocation8 + $0x1], 0 }
   0x3   :  { %15 = vsyncpa [#allocation6], 0 }
   0x4   :  { %17 = vsyncpa [#allocation6 + $0x1], 0 }
   0x5   :  { %18 = vsyncpa [#allocation12], 0 }
   0x6   :  { %20 = vsyncpa [#allocation12 + $0x1], 0  ;;  %s2388_s18 = smov 0   ;;  %s2390_s19 = smov 0  }
   0x7   :  { %s2392_s20 = smov 0   ;;  %s2394_s21 = smov 0  }
   0x8 LB: > { %s2409_s22 = sadd.s32 1, %s2339_s21   ;;  %s54_s23 = sadd.s32 1, %s2335_s20  ;;  %s2339_s21 = sphi %s2394_s21, %s2842_s21   ;;  %s2335_s20 = sphi %s2392_s20, %s2841_s20   ;;  %s2331_s19 = sphi %s2390_s19, %s2840_s19   ;;  %s2327_s18 = sphi %s2388_s18, %s2839_s18  }
   0x9   : > { %s51_s24 = ssub.s32 %s2339_s21, %s2409_s22  ;;  %p61_p0 = scmp.ne.s32.totalorder %s2335_s20, %s2331_s19 }
   0xa   : > { %p52_p1 = scmp.eq.s32.totalorder %s51_s24, 0  ;;  %p62_p2 = scmp.eq.s32.totalorder %s2339_s21, 0 }
   0xb   : > { %p2053_p4 = scmp.lt.s32.totalorder %s2339_s21, 2  ;;  %s208_s26 = sand.u32 1, %s2339_s21  }
   0xc   : > { %s2420_s25 = scalar_select %p52_p1, %s2335_s20, %s54_s23  }
   0xd   : > { %p63_p5 = por %p62_p2, %p61_p0  ;;  %s210_s27 = sand.u32 1, %s2335_s20  }
   0xe   : > { %s2427_s28 = sshll.u32 %s210_s27, 5  ;;  %s1804_s29 = sshll.u32 %s2339_s21, 9 }
   0xf   : > { %s2435_s7 = scalar_lea.hbm %s2813_s1, %s1804_s29  ;;  %s212_s8 = scalar_lea.vmem [#allocation7], %s2427_s28 }
  0x10   : > { %s219_s9 = sshll.u32 %s212_s8, 4  ;;  %p2438_p6 = pnand %p2053_p4, %p63_p5  ;;  %s2442_s9 = int_to_ptr.vmem [resolvable:$true] %s219_s9 }
  0x11   : > { %s2444_s11 = scalar_lea.sflag [#allocation8], %s208_s26  ;;  %s2149_s12 = scalar_lea.hbm %s2435_s7, 512 }
  0x12   : > { %p2150_p7 = scmp.ne.s32.totalorder %s2435_s7, %s2149_s12  ;;  %p2151_p8 = pneg %p2438_p6 }
  0x13   : > { %s2154_s15 = scalar_lea.hbm %s2813_s1, 1024  ;;  %p2155_p11 = scmp.lt.u32.totalorder %s2435_s7, %s2813_s1 }
  0x14   : > { %p2152_p9 = pnand %p2151_p8, %p2150_p7  ;;  %p2156_p12 = scmp.lt.u32.totalorder %s2154_s15, %s2149_s12 }
  0x15   : > { %p2158_p1 = scmp.lt.u32.totalorder %s2149_s12, %s2435_s7 }
  0x16   : > { %p2153_p10 = pneg %p2152_p9  ;;  %p2157_p13 = por %p2156_p12, %p2155_p11 }
  0x18   : > { %p2159_p2 = por %p2158_p1, %p2157_p13 }
  0x1a   : > { %p2160_p4 = pnand %p2159_p2, %p2153_p10 }
  0x1c   : > { %2163 = shalt.err (!%p2160_p4)
}
  0x1d   : > { %s2164_s23 = scalar_lea.vmem %s2442_s9, 512  ;;  %s2341_s24 = smov [#allocation7]  }
  0x1e   : > { %p2165_p5 = scmp.ne.s32.totalorder %s2442_s9, %s2164_s23  ;;  %s2169_s26 = sshll.u32 %s2341_s24, 4  ;;  %s2170_s26 = int_to_ptr.vmem [resolvable:$false] %s2169_s26 }
  0x1f   : > { %s2171_s27 = scalar_lea.vmem %s2170_s26, 1024  ;;  %p2172_p3 = scmp.lt.s32.totalorder %s2442_s9, %s2170_s26 }
  0x20   : > { %p2167_p7 = pnand %p2165_p5, %p2151_p8  ;;  %p2173_p11 = scmp.lt.s32.totalorder %s2171_s27, %s2164_s23 }
  0x22   : > { %p2168_p9 = pneg %p2167_p7  ;;  %p2174_p12 = por %p2173_p11, %p2172_p3 }
  0x24   : > { %p2175_p13 = pnand %p2174_p12, %p2168_p9 }
  0x26   : > { %2178 = shalt.err (!%p2175_p13)
}
  0x27   : > { %s2342_s30 = smov 128   ;;  %s2343_s6 = smov 8  }
  0x28   : > { %2041 = dma.hbm_to_vmem [thread:$0]  (!%p2438_p6), %s2435_s7, 512, %s2442_s9, %s2444_s11, %s2342_s30, %s2342_s30, %s2343_s6  }
  0x29   : > { %s2480_s13 = scalar_lea.hbm %s2814_s2, %s1804_s29  ;;  %s233_s14 = scalar_lea.vmem [#allocation9], %s2427_s28 }
  0x2a   : > { %s240_s15 = sshll.u32 %s233_s14, 4  ;;  %s2484_s16 = sadd.s32 4294967295, %s2339_s21   ;;  %s2511_s15 = int_to_ptr.vmem [resolvable:$true] %s240_s15 }
  0x2b   : > { %s1745_s17 = sadd.s32 4294967294, %s2339_s21   ;;  %p67_p3 = scmp.ne.s32.totalorder %s2331_s19, %s2327_s18 }
  0x2c   : > { %p2818_p10 = scmp.eq.s32.totalorder %s2484_s16, 0  ;;  %p143_p1 = scmp.eq.s32.totalorder %s2484_s16, 1 }
  0x2d   : > { %p149_p2 = scmp.eq.s32.totalorder %s1745_s17, 1  ;;  %p1746_p5 = scmp.ge.s32.totalorder %s2339_s21, 1 }
  0x2e   : > { %p2493_p4 = por %p2818_p10, %p67_p3  ;;  %p2501_p7 = por %p143_p1, %p61_p0 }
  0x2f   : > { %p2505_p9 = por %p149_p2, %p67_p3  ;;  %p182_p11 = scmp.lt.s32.totalorder %s2339_s21, 3 }
  0x30   : > { %s2823_s29 = scalar_select %p2493_p4, 1, 0 }
  0x31   : > { %s2824_s28 = scalar_select %p2501_p7, 1, 0 }
  0x32   : > { %s2825_s7 = scalar_select %p2505_p9, 1, 0 }
  0x33   : > { %p2513_p13 = pnand %p1746_p5, %p182_p11  ;;  %s2344_s23 = smov [#allocation4]  }
  0x34   : > { %s194_s24 = sshll.u32 %s2344_s23, 4  ;;  %s2179_s26 = scalar_lea.hbm %s2480_s13, 512  ;;  %s2519_s24 = int_to_ptr.vmem [resolvable:$true] %s194_s24 }
  0x35   : > { %s2826_s9 = scalar_select %p2513_p13, 1, 0 }
  0x36   : > { %p2180_p3 = scmp.ne.s32.totalorder %s2480_s13, %s2179_s26  ;;  %s2184_s12 = scalar_lea.hbm %s2814_s2, 1024 }
  0x37   : > { %p2185_p5 = scmp.lt.u32.totalorder %s2480_s13, %s2814_s2  ;;  %p2186_p11 = scmp.lt.u32.totalorder %s2184_s12, %s2179_s26 }
  0x38   : > { %p2182_p1 = pnand %p2180_p3, %p2151_p8  ;;  %p2188_p10 = scmp.lt.u32.totalorder %s2179_s26, %s2480_s13 }
  0x39   : > { %p2187_p12 = por %p2186_p11, %p2185_p5 }
  0x3a   : > { %p2183_p2 = pneg %p2182_p1 }
  0x3b   : > { %p2189_p0 = por %p2188_p10, %p2187_p12 }
  0x3d   : > { %p2190_p9 = pnand %p2189_p0, %p2183_p2 }
  0x3f   : > { %2193 = shalt.err (!%p2190_p9)
}
  0x40   : > { %s2194_s23 = scalar_lea.vmem %s2511_s15, 512  ;;  %s2345_s27 = smov [#allocation9]  }
  0x41   : > { %p2195_p3 = scmp.ne.s32.totalorder %s2511_s15, %s2194_s23  ;;  %s2199_s8 = sshll.u32 %s2345_s27, 4  ;;  %s2200_s8 = int_to_ptr.vmem [resolvable:$false] %s2199_s8 }
  0x42   : > { %s2201_s14 = scalar_lea.vmem %s2200_s8, 1024  ;;  %p2202_p4 = scmp.lt.s32.totalorder %s2511_s15, %s2200_s8 }
  0x43   : > { %p2197_p1 = pnand %p2195_p3, %p2151_p8  ;;  %p2203_p5 = scmp.lt.s32.totalorder %s2201_s14, %s2194_s23 }
  0x45   : > { %p2198_p7 = pneg %p2197_p1  ;;  %p2204_p11 = por %p2203_p5, %p2202_p4 }
  0x47   : > { %p2205_p10 = pnand %p2204_p11, %p2198_p7 }
  0x49   : > { %2208 = shalt.err (!%p2205_p10)
}
  0x4a   : > { %2044 = dma.hbm_to_vmem [thread:$0]  (!%p2438_p6), %s2480_s13, 512, %s2511_s15, %s2444_s11, %s2342_s30, %s2342_s30, %s2343_s6  }
  0x4b   : > { %p2827_p8 = scmp.eq.s32.totalorder %s2484_s16, 0  ;;  %p2828_p9 = pneg %p2513_p13 }
  0x4c   : > { %s2209_s10 = scalar_lea.hbm %s2812_s0, 256 }
  0x4d   : > { %p2553_p12 = pnand %p2828_p9, %p2827_p8  ;;  %p2210_p4 = scmp.ne.s32.totalorder %s2812_s0, %s2209_s10 }
  0x4e   : > { %p2216_p2 = scmp.lt.u32.totalorder %s2209_s10, %s2812_s0 }
  0x4f   : > { %p2211_p7 = pneg %p2553_p12 }
  0x51   : > { %p2212_p0 = pnand %p2211_p7, %p2210_p4 }
  0x53   : > { %p2213_p6 = pneg %p2212_p0 }
  0x55   : > { %p2218_p3 = pnand %p2216_p2, %p2213_p6 }
  0x57   : > { %2221 = shalt.err (!%p2218_p3)
}
  0x58   : > { %s2222_s6 = scalar_lea.vmem %s2519_s24, 256  ;;  %p2230_p10 = scmp.lt.s32.totalorder %s2519_s24, %s2519_s24 }
  0x59   : > { %p2223_p1 = scmp.ne.s32.totalorder %s2519_s24, %s2222_s6  ;;  %p2231_p8 = scmp.lt.s32.totalorder %s2222_s6, %s2222_s6 }
  0x5b   : > { %p2225_p5 = pnand %p2223_p1, %p2211_p7  ;;  %p2232_p9 = por %p2231_p8, %p2230_p10 }
  0x5d   : > { %p2226_p11 = pneg %p2225_p5 }
  0x5f   : > { %p2233_p13 = pnand %p2232_p9, %p2226_p11 }
  0x61   : > { %2236 = shalt.err (!%p2233_p13)
}
  0x62   : > { %s2346_s13 = smov 32   ;;  %s2347_s15 = smov 2  }
  0x63   : > { %2037 = dma.hbm_to_vmem [thread:$0]  (!%p2553_p12), %s2812_s0, 256, %s2519_s24, [#allocation5], %s2346_s13, %s2346_s13, %s2347_s15  }
  0x64   : > { %p2830_p4 = scmp.ne.s32.totalorder %s2826_s9, 0 }
  0x65   : > { %p2831_p7 = scmp.eq.s32.totalorder (!%p2830_p4), %s2484_s16, 0 }
  0x66   : > { %258 = sbr.rel (%p2830_p4) target bundleno = 6380 (0x18ec), region = 36 }
  0x6d   : > { %2310 = dma.done.wait (%p2831_p7), [#allocation5], 256   ;;  %p2832_p0 = pmov %p2831_p7 }
  0x6e   : > { %s264_s12 = sand.u32 1, %s2484_s16   ;;  %s2586_s17 = sand.u32 1, %s2331_s19  }
  0x6f   : > { %2312 = vsyncadd (%p2832_p0), [#allocation5], 4294967040  ;;  %s1757_s26 = sshll.u32 %s2586_s17, 5  ;;  %s265_s10 = scalar_lea.sflag [#allocation8], %s264_s12 }
  0x70   : > { %s2589_s23 = scalar_lea.vmem [#allocation7], %s1757_s26  ;;  %p2833_p13 = scmp.ne.s32.totalorder %s2823_s29, 0 }
  0x72   : > { %2314 = dma.done.wait (%p2833_p13), %s265_s10, 1024  }
  0x73   : > { %2316 = vsyncadd (%p2833_p13), %s265_s10, 4294966272  ;;  %p317_p12 = scmp.lt.s32.totalorder %s2484_s16, 1  ;;  %s1759_s9 = sshll.u32 %s2586_s17, 1 }
  0x74   : > { %s2603_s6 = scalar_lea.vmem [#allocation9], %s1757_s26  ;;  %s2605_s13 = scalar_lea.vmem [#allocation10], %s1759_s9 }
  0x75   : > { %s318_s24 = scalar_select %p317_p12, %s2484_s16, 1 }
  0x76   : > { %s2607_s15 = scalar_lea.vmem [#allocation11], %s1759_s9  ;;  %p2834_p6 = scmp.ne.s32.totalorder %s2484_s16, 0 }
  0x77   : > { %s319_s30 = scalar_lea.vmem %s2815_s3, %s318_s24  ;;  %v333_v1 = vld [vmem:[%s2589_s23] sm:$0xff] (!%p2834_p6)  ;;  %v334_v2 = vld [vmem:[%s2589_s23 + $0x8] sm:$0xff] (!%p2834_p6)  ;;  %v325_v3 = vld [vmem:[#allocation4] sm:$0x3] (!%p2834_p6)  ;;  %v336_v4 = vlaneseq (!%p2834_p6)  ;;  %v2348_v9 = vmov (!%p2834_p6), 1983009808  }
  0x78   : > { %v2601_v0 = vld [vmem:[%s319_s30] sm:$0x1]  ;;  %324 = sbr.rel (%p2834_p6) target bundleno = 353 (0x161), region = 52  ;;  %v1962_v5 = vpack.c.bf16 (!%p2834_p6), %v334_v2, %v333_v1  ;;  %v326_v6 = vld [vmem:[#allocation4 + $0x2] sm:$0x3] (!%p2834_p6)  ;;  %v352_v10 = vunpack.c.l.s4 (!%p2834_p6), %v2348_v9  ;;  %vm383_vm0 = vcmask (!%p2834_p6), 130048  }
  0x79   : > { %v327_v7 = vld [vmem:[#allocation4 + $0x4] sm:$0x3] (!%p2834_p6)  ;;  %v328_v8 = vld [vmem:[#allocation4 + $0x6] sm:$0x3] (!%p2834_p6)  ;;  %v337_v11 = vshrl.u32 (!%p2834_p6), %v336_v4, 7  ;;  %v349_v14 = vcombine.low (!%p2834_p6), %v325_v3, %v326_v6 }
  0x7a   : > { %v329_v12 = vld [vmem:[#allocation4 + $0x8] sm:$0x3] (!%p2834_p6)  ;;  %v330_v13 = vld [vmem:[#allocation4 + $0xa] sm:$0x3] (!%p2834_p6)  ;;  %1963 = vmatprep.subr.bf16.mxu0 (!%p2834_p6), %v1962_v5  ;;  %v350_v15 = vcombine.low (!%p2834_p6), %v327_v7, %v328_v8  ;;  %v353_v16 = vunpack.c.0.s8 (!%p2834_p6), %v352_v10  ;;  %v331_v17 = vld [vmem:[#allocation4 + $0xc] sm:$0x3] (!%p2834_p6) }
  0x7b   : > { %v332_v18 = vld [vmem:[#allocation4 + $0xe] sm:$0x3] (!%p2834_p6)  ;;  %v366_v19 = vcombine.low (!%p2834_p6), %v329_v12, %v330_v13  ;;  %1965 = vmatpush3.bf16.msra.mxu0 (!%p2834_p6), %v1962_v5  ;;  %v338_v28 = vsub.s32 (!%p2834_p6), 0, %v337_v11 }
  0x7c   : > { %v367_v20 = vcombine.low (!%p2834_p6), %v331_v17, %v332_v18  ;;  %v356_v21 = vsub.s32 (!%p2834_p6), %v353_v16, %v337_v11 }
  0x7d   : > { %v339_v29 = vrot.slane (!%p2834_p6), %v2601_v0, %v338_v28 }
  0x7e   : > { %v357_v22 = vrot.slane (!%p2834_p6), %v349_v14, %v356_v21  ;;  %v364_v23 = vrot.slane (!%p2834_p6), %v350_v15, %v356_v21  ;;  %v374_v24 = vrot.slane (!%p2834_p6), %v366_v19, %v356_v21  ;;  %v381_v25 = vrot.slane (!%p2834_p6), %v367_v20, %v356_v21 }
  0x80   : > { %v365_v26 = vcombine.low %v357_v22, %v364_v23  ;;  %v382_v27 = vcombine.low %v374_v24, %v381_v25 }
  0x82   : > { %1860 = vmatprep.mubr.msk.f32.mxu0 %vm383_vm0, %v365_v26 }
  0x83   : > { %1861 = vmatmul.mubr.msk.f32.vlgmr.msra.gmra.mrb[0].mxu0 %vm383_vm0, %v382_v27 }
 0x156   : > { %v1862_v30 = vpop.f32.mrb[0].mxu0 }
 0x157   : > { %v460_v31 = vadd.f32 %v1862_v30, %v339_v29  ;;  %v454_v32 = vpop.f32.mrb[1].mxu0 }
 0x158   : > { %v455_v33 = vadd.f32 %v454_v32, %v339_v29 }
 0x159   : > { %v482_v34 = vcombine.high %v460_v31, %v460_v31  ;;  %v489_v35 = vrot.slane %v460_v31, %v356_v21  ;;  %1766 = vst.sshfl [vmem:[#allocation3 + $0x8] sm:$0x3 pattern:$0x76325410] %v460_v31 }
 0x15a   : > { %v465_v36 = vcombine.high %v455_v33, %v455_v33  ;;  %v472_v37 = vrot.slane %v455_v33, %v356_v21  ;;  %1764 = vst.sshfl [vmem:[#allocation3] sm:$0x3 pattern:$0x76325410] %v455_v33 }
 0x15b   : > { %v496_v38 = vrot.slane %v482_v34, %v356_v21  ;;  %v497_v39 = vcombine.high %v489_v35, %v489_v35  ;;  %1767 = vst.sshfl [vmem:[#allocation3 + $0xc] sm:$0x3 pattern:$0x76325410] %v482_v34 }
 0x15c   : > { %v479_v40 = vrot.slane %v465_v36, %v356_v21  ;;  %v480_v41 = vcombine.high %v472_v37, %v472_v37  ;;  %1765 = vst.sshfl [vmem:[#allocation3 + $0x4] sm:$0x3 pattern:$0x76325410] %v465_v36 }
 0x15d   : > { %v498_v42 = vcombine.high %v496_v38, %v496_v38  ;;  %512 = vst [vmem:[#allocation3 + $0xa] sm:$0x3] %v497_v39 }
 0x15e   : > { %v481_v43 = vcombine.high %v479_v40, %v479_v40  ;;  %508 = vst [vmem:[#allocation3 + $0x2] sm:$0x3] %v480_v41 }
 0x15f   : > { %514 = vst [vmem:[#allocation3 + $0xe] sm:$0x3] %v498_v42 }
 0x160   : > { %510 = vst [vmem:[#allocation3 + $0x6] sm:$0x3] %v481_v43 }
 0x161 PF: > { %p2835_p2 = scmp.eq.s32.totalorder %s2484_s16, 0 }
 0x162   : > { %v527_v44 = vld [vmem:[%s2589_s23] sm:$0xff] (!%p2835_p2)  ;;  %v528_v45 = vld [vmem:[%s2589_s23 + $0x8] sm:$0xff] (!%p2835_p2)  ;;  %v529_v46 = vld [vmem:[%s2589_s23 + $0x10] sm:$0xff] (!%p2835_p2)  ;;  %v532_v47 = vlaneseq (!%p2835_p2)  ;;  %v2349_v52 = vmov (!%p2835_p2), 1983009808   ;;  %vm579_vm1 = vcmask (!%p2835_p2), 261120  }
 0x163   : > { %518 = sbr.rel (%p2835_p2) target bundleno = 588 (0x24c), region = 56  ;;  %v1966_v48 = vpack.c.bf16 (!%p2835_p2), %v528_v45, %v527_v44  ;;  %v530_v49 = vld [vmem:[%s2589_s23 + $0x18] sm:$0xff] (!%p2835_p2)  ;;  %v519_v50 = vld [vmem:[#allocation2] sm:$0x3] (!%p2835_p2)  ;;  %v520_v51 = vld [vmem:[#allocation2 + $0x2] sm:$0x3] (!%p2835_p2)  ;;  %v548_v53 = vunpack.c.l.s4 (!%p2835_p2), %v2349_v52 }
 0x164   : > { %v1970_v54 = vpack.c.bf16 (!%p2835_p2), %v530_v49, %v529_v46  ;;  %v521_v55 = vld [vmem:[#allocation2 + $0x4] sm:$0x3] (!%p2835_p2)  ;;  %v522_v56 = vld [vmem:[#allocation2 + $0x6] sm:$0x3] (!%p2835_p2)  ;;  %v533_v57 = vshrl.u32 (!%p2835_p2), %v532_v47, 7  ;;  %v545_v58 = vcombine.low (!%p2835_p2), %v519_v50, %v520_v51 }
 0x165   : > { %1967 = vmatprep.subr.bf16.mxu0 (!%p2835_p2), %v1966_v48  ;;  %v546_v59 = vcombine.low (!%p2835_p2), %v521_v55, %v522_v56  ;;  %v549_v60 = vunpack.c.0.s8 (!%p2835_p2), %v548_v53  ;;  %v523_v61 = vld [vmem:[#allocation2 + $0x8] sm:$0x3] (!%p2835_p2)  ;;  %v524_v62 = vld [vmem:[#allocation2 + $0xa] sm:$0x3] (!%p2835_p2)  ;;  %v525_v63 = vld [vmem:[#allocation2 + $0xc] sm:$0x3] (!%p2835_p2) }
 0x166   : > { %1969 = vmatpush3.bf16.msra.mxu0 (!%p2835_p2), %v1966_v48  ;;  %v526_v1 = vld [vmem:[#allocation2 + $0xe] sm:$0x3] (!%p2835_p2)  ;;  %v562_v2 = vcombine.low (!%p2835_p2), %v523_v61, %v524_v62  ;;  %v534_v11 = vsub.s32 (!%p2835_p2), 0, %v533_v57 }
 0x167   : > { %1971 = vmatprep.subr.bf16.mxu0 (!%p2835_p2), %v1970_v54  ;;  %v552_v3 = vsub.s32 (!%p2835_p2), %v549_v60, %v533_v57  ;;  %v563_v4 = vcombine.low (!%p2835_p2), %v525_v63, %v526_v1 }
 0x168   : > { %v535_v12 = vrot.slane (!%p2835_p2), %v2601_v0, %v534_v11 }
 0x169   : > { %v553_v5 = vrot.slane (!%p2835_p2), %v545_v58, %v552_v3  ;;  %v560_v6 = vrot.slane (!%p2835_p2), %v546_v59, %v552_v3  ;;  %v570_v7 = vrot.slane (!%p2835_p2), %v562_v2, %v552_v3  ;;  %v577_v8 = vrot.slane (!%p2835_p2), %v563_v4, %v552_v3 }
 0x16a   : > { %1973 = vmatpush3.bf16.msra.mxu0 %v1970_v54 }
 0x16b   : > { %v561_v9 = vcombine.low %v553_v5, %v560_v6  ;;  %v578_v10 = vcombine.low %v570_v7, %v577_v8 }
 0x16d   : > { %1871 = vmatprep.mubr.msk.f32.mxu0 %vm579_vm1, %v561_v9 }
 0x16e   : > { %1872 = vmatmul.mubr.msk.f32.vlgmr.msra.gmra.mrb[0].mxu0 %vm579_vm1, %v578_v10 }
 0x241   : > { %v1873_v13 = vpop.f32.mrb[0].mxu0 }
 0x242   : > { %v656_v14 = vadd.f32 %v1873_v13, %v535_v12  ;;  %v650_v15 = vpop.f32.mrb[1].mxu0 }
 0x243   : > { %v651_v16 = vadd.f32 %v650_v15, %v535_v12 }
 0x244   : > { %v678_v17 = vcombine.high %v656_v14, %v656_v14  ;;  %v685_v18 = vrot.slane %v656_v14, %v552_v3  ;;  %1773 = vst.sshfl [vmem:[#allocation3 + $0x8] sm:$0x3 pattern:$0x76325410] %v656_v14 }
 0x245   : > { %v661_v19 = vcombine.high %v651_v16, %v651_v16  ;;  %v668_v20 = vrot.slane %v651_v16, %v552_v3  ;;  %1771 = vst.sshfl [vmem:[#allocation3] sm:$0x3 pattern:$0x76325410] %v651_v16 }
 0x246   : > { %v692_v21 = vrot.slane %v678_v17, %v552_v3  ;;  %v693_v22 = vcombine.high %v685_v18, %v685_v18  ;;  %1774 = vst.sshfl [vmem:[#allocation3 + $0xc] sm:$0x3 pattern:$0x76325410] %v678_v17 }
 0x247   : > { %v675_v23 = vrot.slane %v661_v19, %v552_v3  ;;  %v676_v24 = vcombine.high %v668_v20, %v668_v20  ;;  %1772 = vst.sshfl [vmem:[#allocation3 + $0x4] sm:$0x3 pattern:$0x76325410] %v661_v19 }
 0x248   : > { %v694_v25 = vcombine.high %v692_v21, %v692_v21  ;;  %708 = vst [vmem:[#allocation3 + $0xa] sm:$0x3] %v693_v22 }
 0x249   : > { %v677_v26 = vcombine.high %v675_v23, %v675_v23  ;;  %704 = vst [vmem:[#allocation3 + $0x2] sm:$0x3] %v676_v24 }
 0x24a   : > { %710 = vst [vmem:[#allocation3 + $0xe] sm:$0x3] %v694_v25 }
 0x24b   : > { %706 = vst [vmem:[#allocation3 + $0x6] sm:$0x3] %v677_v26 }
 0x24c PF: > { %v711_v0 = vld [vmem:[%s2603_s6] sm:$0xff]  ;;  %v712_v27 = vld [vmem:[%s2603_s6 + $0x8] sm:$0xff]  ;;  %v713_v28 = vld [vmem:[%s2603_s6 + $0x10] sm:$0xff]  ;;  %v2350_v29 = vmov 0.0|0.0   ;;  %vm2351_vm2 = vmmov 0   ;;  %v2352_v32 = vmov 0.0  }
 0x24d   : > { %1974 = vmatprep.subr.bf16.mxu0 %v2350_v29  ;;  %v2625_v30 = vpack.c.bf16 %v712_v27, %v711_v0  ;;  %v714_v31 = vld [vmem:[%s2603_s6 + $0x18] sm:$0xff]  ;;  %1882 = vmatprep.mubr.msk.f32.mxu0 %vm2351_vm2, %v2352_v32  ;;  %v715_v34 = vld [vmem:[#allocation3] sm:$0x3]  ;;  %s2353_s29 = smov 64   ;;  %s2354_s8 = smov 32   ;;  %vm820_vm3 = vcmask 254976  }
 0x24e   : > { %1980 = vmatprep.subr.bf16.mxu1 %v2350_v29  ;;  %1893 = vmatprep.mubr.msk.f32.mxu1 %vm2351_vm2, %v2352_v32  ;;  %v2634_v33 = vpack.c.bf16 %v714_v31, %v713_v28  ;;  %vm716_vm4 = vcmask 261120   ;;  %v929_v9 = vld [vmem:[#allocation3 + $0x4] sm:$0x3]  ;;  %s2355_s14 = smov 96   ;;  %s1800_s12 = sshll.u32 %s2484_s16, 5 }
 0x24f   : > { %1976 = vmatpush3.bf16.msra.mxu0 %v2625_v30  ;;  %1982 = vmatpush3.bf16.msra.mxu1 %v2625_v30  ;;  %s1602_s26 = sshll.u32 %s2607_s15, 4  ;;  %s2731_s9 = scalar_lea.hbm %s2817_s5, %s1800_s12  ;;  %s2733_s26 = int_to_ptr.vmem [resolvable:$true] %s1602_s26 }
 0x250   : > { %1977 = vmatprep.subr.bf16.mxu0 %v2350_v29  ;;  %1983 = vmatprep.subr.bf16.mxu1 %v2350_v29  ;;  %v823_v53 = vld [vmem:[#allocation3 + $0x2] sm:$0x3]  ;;  %s1576_s24 = scalar_lea.sflag [#allocation12], %s2586_s17  ;;  %s2237_s27 = scalar_lea.vmem %s2733_s26, 32 }
 0x251   : > { %p2238_p3 = scmp.ne.s32.totalorder %s2733_s26, %s2237_s27  ;;  %p2836_p1 = scmp.ne.s32.totalorder %s2824_s28, 0 }
 0x252   : > { %v1035_v27 = vld [vmem:[#allocation3 + $0x6] sm:$0x3]  ;;  %s2356_s11 = smov [#allocation11]  }
 0x253   : > { %1979 = vmatpush3.bf16.msra.mxu0 %v2634_v33  ;;  %1985 = vmatpush3.bf16.msra.mxu1 %v2634_v33  ;;  %p2239_p5 = pnand %p2238_p3, %p2836_p1  ;;  %s2241_s30 = sshll.u32 %s2356_s11, 4  ;;  %s2242_s30 = int_to_ptr.vmem [resolvable:$false] %s2241_s30 }
 0x254   : > { %1986 = vmatprep.subr.bf16.mxu0 %v2350_v29  ;;  %1992 = vmatprep.subr.bf16.mxu1 %v2350_v29  ;;  %s2243_s6 = scalar_lea.vmem %s2242_s30, 64  ;;  %p2244_p10 = scmp.lt.s32.totalorder %s2733_s26, %s2242_s30 }
 0x255   : > { %p2240_p11 = pneg %p2239_p5  ;;  %p2245_p8 = scmp.lt.s32.totalorder %s2243_s6, %s2237_s27 }
 0x256   : > { %1883 = vmatmul.mubr.f32.vlgmr.msra.gmra.mrb[0].mxu0 %v2352_v32 }
 0x257   : > { %1988 = vmatpush3.bf16.msra.mxu0 %v2625_v30  ;;  %1904 = vmatprep.mubr.msk.f32.mxu0 %vm2351_vm2, %v2352_v32  ;;  %p2246_p9 = por %p2245_p8, %p2244_p10 }
 0x258   : > { %1989 = vmatprep.subr.bf16.mxu0 %v2350_v29 }
 0x259   : > { %p2247_p4 = pnand %p2246_p9, %p2240_p11 }
 0x25b   : > { %1991 = vmatpush3.bf16.msra.mxu0 %v2634_v33 }
 0x25c   : > { %1998 = vmatprep.subr.bf16.mxu0 %v2350_v29 }
 0x329   : > { %v786_v35 = vpop.f32.mrb[0].mxu0 }
 0x32a   : > { %v790_v36 = vadd.f32 %v786_v35, %v715_v34  ;;  %v1884_v37 = vpop.f32.mrb[1].mxu0 }
 0x32c   : > { %v1775_v38 = vmul.f32 -1.442695, %v790_v36 }
 0x32e   : > { %2101 = vpow2.f32 %v1775_v38 }
 0x338   : > { %v2102_v39 = vpop.eup %2101 }
 0x339   : > { %v794_v40 = vadd.f32 1.0, %v2102_v39 }
 0x33b   : > { %2103 = vrcp.f32 %v794_v40 }
 0x345   : > { %v2104_v41 = vpop.eup %2103 }
 0x346   : > { %v797_v42 = vmul.f32 2.0, %v2104_v41  ;;  %v799_v46 = vmul.f32 0.0, %v2104_v41 }
 0x348   : > { %v1776_v43 = vadd.f32 -1.0, %v797_v42 }
 0x34a   : > { %801 = vrot.lane.b32.xlu0 %v1776_v43, %s2353_s29 }
 0x3bc   : > { %v802_v44 = vpop.permute.xlu0 %801 }
 0x3bd   : > { %v804_v45 = vmul.f32 %v2104_v41, %v802_v44 }
 0x3bf   : > { %806 = vrot.lane.b32.xlu0 %v804_v45, %s2354_s8 }
 0x431   : > { %v807_v47 = vpop.permute.xlu0 %806 }
 0x432   : > { %v809_v48 = vadd.f32 %v807_v47, %v799_v46 }
 0x434   : > { %2105 = vtanh.f32 %v809_v48 }
 0x43e   : > { %v2106_v49 = vpop.eup %2105 }
 0x43f   : > { %812 = vrot.lane.b32.xlu1 %v2106_v49, %s2353_s29 }
 0x4b1   : > { %v813_v50 = vpop.permute.xlu1 %812 }
 0x4b2   : > { %v815_v51 = vmul.f32 %v2104_v41, %v813_v50  ;;  %v1141_v50 = vld [vmem:[#allocation3 + $0x8] sm:$0x3] }
 0x4b4   : > { %817 = vrot.lane.b32.xlu1 %v815_v51, %s2354_s8 }
 0x526   : > { %v818_v52 = vpop.permute.xlu1 %817 }
 0x527   : > { %821 = vst.msk [vmem:[#allocation2] sm:$0x3] %vm820_vm3, %v818_v52  ;;  %1894 = vmatmul.mubr.msk.f32.vlgmr.msra.gmra.mrb[0].mxu1 %vm716_vm4, %v818_v52 }
 0x528   : > { %1994 = vmatpush3.bf16.msra.mxu1 %v2625_v30  ;;  %1915 = vmatprep.mubr.msk.f32.mxu1 %vm2351_vm2, %v2352_v32 }
 0x529   : > { %1995 = vmatprep.subr.bf16.mxu1 %v2350_v29 }
 0x52c   : > { %1997 = vmatpush3.bf16.msra.mxu1 %v2634_v33 }
 0x52d   : > { %2004 = vmatprep.subr.bf16.mxu1 %v2350_v29 }
 0x5fa   : > { %v892_v54 = vpop.f32.mrb[0].mxu1 }
 0x5fb   : > { %v896_v55 = vadd.f32 %v892_v54, %v823_v53  ;;  %v1895_v56 = vpop.f32.mrb[1].mxu1 }
 0x5fd   : > { %v1778_v57 = vmul.f32 -1.442695, %v896_v55 }
 0x5ff   : > { %2107 = vpow2.f32 %v1778_v57 }
 0x609   : > { %v2108_v58 = vpop.eup %2107 }
 0x60a   : > { %v900_v59 = vadd.f32 1.0, %v2108_v58 }
 0x60c   : > { %2109 = vrcp.f32 %v900_v59 }
 0x616   : > { %v2110_v60 = vpop.eup %2109 }
 0x617   : > { %v903_v61 = vmul.f32 2.0, %v2110_v60  ;;  %v905_v2 = vmul.f32 %v2110_v60, %v809_v48 }
 0x619   : > { %v1779_v62 = vadd.f32 -1.0, %v903_v61 }
 0x61b   : > { %907 = vrot.lane.b32.xlu0 %v1779_v62, %s2353_s29 }
 0x68d   : > { %v908_v63 = vpop.permute.xlu0 %907 }
 0x68e   : > { %v910_v1 = vmul.f32 %v2110_v60, %v908_v63 }
 0x690   : > { %912 = vrot.lane.b32.xlu1 %v910_v1, %s2354_s8 }
 0x702   : > { %v913_v3 = vpop.permute.xlu1 %912 }
 0x703   : > { %v915_v4 = vadd.f32 %v913_v3, %v905_v2 }
 0x705   : > { %2111 = vtanh.f32 %v915_v4 }
 0x70f   : > { %v2112_v5 = vpop.eup %2111 }
 0x710   : > { %918 = vrot.lane.b32.xlu0 %v2112_v5, %s2353_s29 }
 0x782   : > { %v919_v6 = vpop.permute.xlu0 %918 }
 0x783   : > { %v921_v7 = vmul.f32 %v2110_v60, %v919_v6  ;;  %v1247_v6 = vld [vmem:[#allocation3 + $0xa] sm:$0x3] }
 0x785   : > { %923 = vrot.lane.b32.xlu1 %v921_v7, %s2354_s8 }
 0x7f7   : > { %v924_v8 = vpop.permute.xlu1 %923 }
 0x7f8   : > { %927 = vst.msk [vmem:[#allocation2 + $0x2] sm:$0x3] %vm820_vm3, %v924_v8  ;;  %1905 = vmatmul.mubr.msk.f32.vlgmr.msra.gmra.mrb[2].mxu0 %vm716_vm4, %v924_v8 }
 0x7f9   : > { %2000 = vmatpush3.bf16.msra.mxu0 %v2625_v30  ;;  %1926 = vmatprep.mubr.msk.f32.mxu0 %vm2351_vm2, %v2352_v32 }
 0x7fa   : > { %2001 = vmatprep.subr.bf16.mxu0 %v2350_v29 }
 0x7fd   : > { %2003 = vmatpush3.bf16.msra.mxu0 %v2634_v33 }
 0x7fe   : > { %2010 = vmatprep.subr.bf16.mxu0 %v2350_v29 }
 0x8cb   : > { %v998_v10 = vpop.f32.mrb[2].mxu0 }
 0x8cc   : > { %v1002_v11 = vadd.f32 %v998_v10, %v929_v9  ;;  %v1906_v12 = vpop.f32.mrb[3].mxu0 }
 0x8ce   : > { %v1781_v13 = vmul.f32 -1.442695, %v1002_v11 }
 0x8d0   : > { %2113 = vpow2.f32 %v1781_v13 }
 0x8da   : > { %v2114_v14 = vpop.eup %2113 }
 0x8db   : > { %v1006_v15 = vadd.f32 1.0, %v2114_v14 }
 0x8dd   : > { %2115 = vrcp.f32 %v1006_v15 }
 0x8e7   : > { %v2116_v16 = vpop.eup %2115 }
 0x8e8   : > { %v1009_v17 = vmul.f32 2.0, %v2116_v16  ;;  %v1011_v21 = vmul.f32 %v2116_v16, %v915_v4 }
 0x8ea   : > { %v1782_v18 = vadd.f32 -1.0, %v1009_v17 }
 0x8ec   : > { %1013 = vrot.lane.b32.xlu0 %v1782_v18, %s2353_s29 }
 0x95e   : > { %v1014_v19 = vpop.permute.xlu0 %1013 }
 0x95f   : > { %v1016_v20 = vmul.f32 %v2116_v16, %v1014_v19 }
 0x961   : > { %1018 = vrot.lane.b32.xlu1 %v1016_v20, %s2354_s8 }
 0x9d3   : > { %v1019_v22 = vpop.permute.xlu1 %1018 }
 0x9d4   : > { %v1021_v23 = vadd.f32 %v1019_v22, %v1011_v21  ;;  %v1353_v21 = vld [vmem:[#allocation3 + $0xc] sm:$0x3] }
 0x9d6   : > { %2117 = vtanh.f32 %v1021_v23 }
 0x9e0   : > { %v2118_v24 = vpop.eup %2117 }
 0x9e1   : > { %1024 = vrot.lane.b32.xlu0 %v2118_v24, %s2353_s29 }
 0xa53   : > { %v1025_v25 = vpop.permute.xlu0 %1024 }
 0xa54   : > { %v1027_v26 = vmul.f32 %v2116_v16, %v1025_v25 }
 0xa56   : > { %1029 = vrot.lane.b32.xlu1 %v1027_v26, %s2354_s8 }
 0xac8   : > { %v1030_v0 = vpop.permute.xlu1 %1029 }
 0xac9   : > { %1033 = vst.msk [vmem:[#allocation2 + $0x4] sm:$0x3] %vm820_vm3, %v1030_v0  ;;  %1916 = vmatmul.mubr.msk.f32.vlgmr.msra.gmra.mrb[2].mxu1 %vm716_vm4, %v1030_v0 }
 0xaca   : > { %2006 = vmatpush3.bf16.msra.mxu1 %v2625_v30  ;;  %1937 = vmatprep.mubr.msk.f32.mxu1 %vm2351_vm2, %v2352_v32 }
 0xacb   : > { %2007 = vmatprep.subr.bf16.mxu1 %v2350_v29 }
 0xace   : > { %2009 = vmatpush3.bf16.msra.mxu1 %v2634_v33 }
 0xacf   : > { %2016 = vmatprep.subr.bf16.mxu1 %v2350_v29 }
 0xb9c   : > { %v1104_v28 = vpop.f32.mrb[2].mxu1 }
 0xb9d   : > { %v1108_v31 = vadd.f32 %v1104_v28, %v1035_v27  ;;  %v1917_v34 = vpop.f32.mrb[3].mxu1 }
 0xb9f   : > { %v1784_v35 = vmul.f32 -1.442695, %v1108_v31 }
 0xba1   : > { %2119 = vpow2.f32 %v1784_v35 }
 0xbab   : > { %v2120_v36 = vpop.eup %2119 }
 0xbac   : > { %v1112_v37 = vadd.f32 1.0, %v2120_v36 }
 0xbae   : > { %2121 = vrcp.f32 %v1112_v37 }
 0xbb8   : > { %v2122_v38 = vpop.eup %2121 }
 0xbb9   : > { %v1115_v39 = vmul.f32 2.0, %v2122_v38  ;;  %v1117_v43 = vmul.f32 %v2122_v38, %v1021_v23 }
 0xbbb   : > { %v1785_v40 = vadd.f32 -1.0, %v1115_v39 }
 0xbbd   : > { %1119 = vrot.lane.b32.xlu0 %v1785_v40, %s2353_s29 }
 0xc2f   : > { %v1120_v41 = vpop.permute.xlu0 %1119 }
 0xc30   : > { %v1122_v42 = vmul.f32 %v2122_v38, %v1120_v41 }
 0xc32   : > { %1124 = vrot.lane.b32.xlu1 %v1122_v42, %s2354_s8 }
 0xca4   : > { %v1125_v44 = vpop.permute.xlu1 %1124 }
 0xca5   : > { %v1127_v45 = vadd.f32 %v1125_v44, %v1117_v43  ;;  %v1459_v43 = vld [vmem:[#allocation3 + $0xe] sm:$0x3] }
 0xca7   : > { %2123 = vtanh.f32 %v1127_v45 }
 0xcb1   : > { %v2124_v46 = vpop.eup %2123 }
 0xcb2   : > { %1130 = vrot.lane.b32.xlu0 %v2124_v46, %s2353_s29 }
 0xd24   : > { %v1131_v47 = vpop.permute.xlu0 %1130 }
 0xd25   : > { %v1133_v48 = vmul.f32 %v2122_v38, %v1131_v47 }
 0xd27   : > { %1135 = vrot.lane.b32.xlu1 %v1133_v48, %s2354_s8 }
 0xd99   : > { %v1136_v49 = vpop.permute.xlu1 %1135 }
 0xd9a   : > { %1139 = vst.msk [vmem:[#allocation2 + $0x6] sm:$0x3] %vm820_vm3, %v1136_v49  ;;  %1927 = vmatmul.mubr.msk.f32.vlgmr.msra.gmra.mrb[4].mxu0 %vm716_vm4, %v1136_v49 }
 0xd9b   : > { %2012 = vmatpush3.bf16.msra.mxu0 %v2625_v30  ;;  %1948 = vmatprep.mubr.msk.f32.mxu0 %vm2351_vm2, %v2352_v32 }
 0xd9c   : > { %2013 = vmatprep.subr.bf16.mxu0 %v2350_v29 }
 0xd9f   : > { %2015 = vmatpush3.bf16.msra.mxu0 %v2634_v33 }
 0xe6d   : > { %v1210_v51 = vpop.f32.mrb[4].mxu0 }
 0xe6e   : > { %v1214_v52 = vadd.f32 %v1210_v51, %v1141_v50  ;;  %v1928_v53 = vpop.f32.mrb[5].mxu0 }
 0xe70   : > { %v1787_v54 = vmul.f32 -1.442695, %v1214_v52 }
 0xe72   : > { %2125 = vpow2.f32 %v1787_v54 }
 0xe7c   : > { %v2126_v55 = vpop.eup %2125 }
 0xe7d   : > { %v1218_v56 = vadd.f32 1.0, %v2126_v55 }
 0xe7f   : > { %2127 = vrcp.f32 %v1218_v56 }
 0xe89   : > { %v2128_v57 = vpop.eup %2127 }
 0xe8a   : > { %v1221_v58 = vmul.f32 2.0, %v2128_v57  ;;  %v1223_v62 = vmul.f32 %v2128_v57, %v1127_v45 }
 0xe8c   : > { %v1788_v59 = vadd.f32 -1.0, %v1221_v58 }
 0xe8e   : > { %1225 = vrot.lane.b32.xlu0 %v1788_v59, %s2353_s29 }
 0xf00   : > { %v1226_v60 = vpop.permute.xlu0 %1225 }
 0xf01   : > { %v1228_v61 = vmul.f32 %v2128_v57, %v1226_v60 }
 0xf03   : > { %1230 = vrot.lane.b32.xlu1 %v1228_v61, %s2354_s8 }
 0xf75   : > { %v1231_v63 = vpop.permute.xlu1 %1230 }
 0xf76   : > { %v1233_v1 = vadd.f32 %v1231_v63, %v1223_v62 }
 0xf78   : > { %2129 = vtanh.f32 %v1233_v1 }
 0xf82   : > { %v2130_v2 = vpop.eup %2129 }
 0xf83   : > { %1236 = vrot.lane.b32.xlu0 %v2130_v2, %s2353_s29 }
 0xff5   : > { %v1237_v3 = vpop.permute.xlu0 %1236 }
 0xff6   : > { %v1239_v4 = vmul.f32 %v2128_v57, %v1237_v3 }
 0xff8   : > { %1241 = vrot.lane.b32.xlu1 %v1239_v4, %s2354_s8 }
0x106a   : > { %v1242_v5 = vpop.permute.xlu1 %1241 }
0x106b   : > { %1245 = vst.msk [vmem:[#allocation2 + $0x8] sm:$0x3] %vm820_vm3, %v1242_v5  ;;  %1938 = vmatmul.mubr.msk.f32.vlgmr.msra.gmra.mrb[4].mxu1 %vm716_vm4, %v1242_v5 }
0x106c   : > { %2018 = vmatpush3.bf16.msra.mxu1 %v2625_v30  ;;  %1959 = vmatprep.mubr.msk.f32.mxu1 %vm2351_vm2, %v2352_v32 }
0x106d   : > { %2019 = vmatprep.subr.bf16.mxu1 %v2350_v29 }
0x1070   : > { %2021 = vmatpush3.bf16.msra.mxu1 %v2634_v33 }
0x113e   : > { %v1316_v7 = vpop.f32.mrb[4].mxu1 }
0x113f   : > { %v1320_v8 = vadd.f32 %v1316_v7, %v1247_v6  ;;  %v1939_v9 = vpop.f32.mrb[5].mxu1 }
0x1141   : > { %v1790_v10 = vmul.f32 -1.442695, %v1320_v8 }
0x1143   : > { %2131 = vpow2.f32 %v1790_v10 }
0x114d   : > { %v2132_v11 = vpop.eup %2131 }
0x114e   : > { %v1324_v12 = vadd.f32 1.0, %v2132_v11 }
0x1150   : > { %2133 = vrcp.f32 %v1324_v12 }
0x115a   : > { %v2134_v13 = vpop.eup %2133 }
0x115b   : > { %v1327_v14 = vmul.f32 2.0, %v2134_v13  ;;  %v1329_v29 = vmul.f32 %v2134_v13, %v1233_v1 }
0x115d   : > { %v1791_v15 = vadd.f32 -1.0, %v1327_v14 }
0x115f   : > { %1331 = vrot.lane.b32.xlu0 %v1791_v15, %s2353_s29 }
0x11d1   : > { %v1332_v30 = vpop.permute.xlu0 %1331 }
0x11d2   : > { %v1334_v32 = vmul.f32 %v2134_v13, %v1332_v30 }
0x11d4   : > { %1336 = vrot.lane.b32.xlu1 %v1334_v32, %s2354_s8 }
0x1246   : > { %v1337_v33 = vpop.permute.xlu1 %1336 }
0x1247   : > { %v1339_v16 = vadd.f32 %v1337_v33, %v1329_v29 }
0x1249   : > { %2135 = vtanh.f32 %v1339_v16 }
0x1253   : > { %v2136_v17 = vpop.eup %2135 }
0x1254   : > { %1342 = vrot.lane.b32.xlu0 %v2136_v17, %s2353_s29 }
0x12c6   : > { %v1343_v18 = vpop.permute.xlu0 %1342 }
0x12c7   : > { %v1345_v19 = vmul.f32 %v2134_v13, %v1343_v18 }
0x12c9   : > { %1347 = vrot.lane.b32.xlu1 %v1345_v19, %s2354_s8 }
0x133b   : > { %v1348_v20 = vpop.permute.xlu1 %1347 }
0x133c   : > { %1351 = vst.msk [vmem:[#allocation2 + $0xa] sm:$0x3] %vm820_vm3, %v1348_v20  ;;  %1949 = vmatmul.mubr.msk.f32.vlgmr.msra.gmra.mrb[6].mxu0 %vm716_vm4, %v1348_v20 }
0x140f   : > { %v1422_v22 = vpop.f32.mrb[6].mxu0 }
0x1410   : > { %v1426_v23 = vadd.f32 %v1422_v22, %v1353_v21  ;;  %v1950_v24 = vpop.f32.mrb[7].mxu0 }
0x1412   : > { %v1793_v25 = vmul.f32 -1.442695, %v1426_v23 }
0x1414   : > { %2137 = vpow2.f32 %v1793_v25 }
0x141e   : > { %v2138_v26 = vpop.eup %2137 }
0x141f   : > { %v1430_v0 = vadd.f32 1.0, %v2138_v26 }
0x1421   : > { %2139 = vrcp.f32 %v1430_v0 }
0x142b   : > { %v2140_v27 = vpop.eup %2139 }
0x142c   : > { %v1433_v28 = vmul.f32 2.0, %v2140_v27  ;;  %v1435_v36 = vmul.f32 %v2140_v27, %v1339_v16 }
0x142e   : > { %v1794_v31 = vadd.f32 -1.0, %v1433_v28 }
0x1430   : > { %1437 = vrot.lane.b32.xlu0 %v1794_v31, %s2353_s29 }
0x14a2   : > { %v1438_v34 = vpop.permute.xlu0 %1437 }
0x14a3   : > { %v1440_v35 = vmul.f32 %v2140_v27, %v1438_v34 }
0x14a5   : > { %1442 = vrot.lane.b32.xlu1 %v1440_v35, %s2354_s8 }
0x1517   : > { %v1443_v37 = vpop.permute.xlu1 %1442 }
0x1518   : > { %v1445_v38 = vadd.f32 %v1443_v37, %v1435_v36 }
0x151a   : > { %2141 = vtanh.f32 %v1445_v38 }
0x1524   : > { %v2142_v39 = vpop.eup %2141 }
0x1525   : > { %1448 = vrot.lane.b32.xlu0 %v2142_v39, %s2353_s29 }
0x1597   : > { %v1449_v40 = vpop.permute.xlu0 %1448 }
0x1598   : > { %v1451_v41 = vmul.f32 %v2140_v27, %v1449_v40 }
0x159a   : > { %1453 = vrot.lane.b32.xlu1 %v1451_v41, %s2354_s8 }
0x160c   : > { %v1454_v42 = vpop.permute.xlu1 %1453 }
0x160d   : > { %1457 = vst.msk [vmem:[#allocation2 + $0xc] sm:$0x3] %vm820_vm3, %v1454_v42  ;;  %1960 = vmatmul.mubr.msk.f32.vlgmr.msra.gmra.mrb[6].mxu1 %vm716_vm4, %v1454_v42 }
0x16e0   : > { %v1528_v44 = vpop.f32.mrb[6].mxu1 }
0x16e1   : > { %v1532_v45 = vadd.f32 %v1528_v44, %v1459_v43  ;;  %v1961_v46 = vpop.f32.mrb[7].mxu1 }
0x16e3   : > { %v1796_v47 = vmul.f32 -1.442695, %v1532_v45 }
0x16e5   : > { %2143 = vpow2.f32 %v1796_v47 }
0x16ef   : > { %v2144_v48 = vpop.eup %2143 }
0x16f0   : > { %v1536_v49 = vadd.f32 1.0, %v2144_v48 }
0x16f2   : > { %2145 = vrcp.f32 %v1536_v49 }
0x16fc   : > { %v2146_v50 = vpop.eup %2145 }
0x16fd   : > { %v1539_v51 = vmul.f32 2.0, %v2146_v50  ;;  %v1541_v55 = vmul.f32 %v2146_v50, %v1445_v38 }
0x16ff   : > { %v1797_v52 = vadd.f32 -1.0, %v1539_v51 }
0x1701   : > { %1543 = vrot.lane.b32.xlu0 %v1797_v52, %s2353_s29 }
0x1773   : > { %v1544_v53 = vpop.permute.xlu0 %1543 }
0x1774   : > { %v1546_v54 = vmul.f32 %v2146_v50, %v1544_v53 }
0x1776   : > { %1548 = vrot.lane.b32.xlu1 %v1546_v54, %s2354_s8 }
0x17e8   : > { %v1549_v56 = vpop.permute.xlu1 %1548 }
0x17e9   : > { %v1551_v57 = vadd.f32 %v1549_v56, %v1541_v55 }
0x17eb   : > { %2147 = vtanh.f32 %v1551_v57 }
0x17f5   : > { %v2148_v58 = vpop.eup %2147 }
0x17f6   : > { %1554 = vrot.lane.b32.xlu0 %v2148_v58, %s2353_s29 }
0x17fa   : > { %1566 = vrot.lane.b32.xlu0 %v1551_v57, %s2355_s14 }
0x1868   : > { %v1555_v59 = vpop.permute.xlu0 %1554 }
0x1869   : > { %v1557_v60 = vmul.f32 %v2146_v50, %v1555_v59 }
0x186b   : > { %1559 = vrot.lane.b32.xlu1 %v1557_v60, %s2354_s8 }
0x186c   : > { %v1567_v61 = vpop.permute.xlu0 %1566 }
0x186d   : > { %1569 = vst.msk [vmem:[%s2607_s15] sm:$0x3] %vm820_vm3, %v1567_v61 }
0x186e   : > { %2250 = shalt.err (!%p2247_p4)
}
0x186f   : > { %s2251_s15 = scalar_lea.hbm %s2731_s9, 32  ;;  %s2255_s14 = scalar_lea.hbm %s2817_s5, 64 }
0x1870   : > { %p2252_p7 = scmp.ne.s32.totalorder %s2731_s9, %s2251_s15  ;;  %p2256_p12 = scmp.lt.u32.totalorder %s2731_s9, %s2817_s5 }
0x1871   : > { %p2257_p6 = scmp.lt.u32.totalorder %s2255_s14, %s2251_s15  ;;  %p2259_p3 = scmp.lt.u32.totalorder %s2251_s15, %s2731_s9 }
0x1872   : > { %p2253_p0 = pnand %p2252_p7, %p2836_p1 }
0x1873   : > { %p2258_p2 = por %p2257_p6, %p2256_p12 }
0x1874   : > { %p2254_p13 = pneg %p2253_p0 }
0x1875   : > { %p2260_p5 = por %p2259_p3, %p2258_p2 }
0x1877   : > { %p2261_p11 = pnand %p2260_p5, %p2254_p13 }
0x1879   : > { %2264 = shalt.err (!%p2261_p11)
}
0x187a   : > { %2031 = dma.vmem_to_hbm [thread:$0]  (%p2836_p1), %s2733_s26, 32, %s2731_s9, %s1576_s24  }
0x187b   : > { %s1589_s27 = sshll.u32 %s2605_s13, 4  ;;  %s2765_s6 = scalar_lea.hbm %s2816_s4, %s1800_s12  ;;  %s2767_s27 = int_to_ptr.vmem [resolvable:$true] %s1589_s27 }
0x187c   : > { %s1571_s15 = scalar_lea.sflag [#allocation6], %s2586_s17  ;;  %s2265_s29 = scalar_lea.vmem %s2767_s27, 32 }
0x187d   : > { %p2266_p10 = scmp.ne.s32.totalorder %s2767_s27, %s2265_s29  ;;  %s2357_s16 = smov [#allocation10]  }
0x187e   : > { %s2269_s26 = sshll.u32 %s2357_s16, 4  ;;  %s2270_s26 = int_to_ptr.vmem [resolvable:$false] %s2269_s26 }
0x187f   : > { %p2267_p8 = pnand %p2266_p10, %p2836_p1  ;;  %s2271_s12 = scalar_lea.vmem %s2270_s26, 64 }
0x1880   : > { %p2272_p4 = scmp.lt.s32.totalorder %s2767_s27, %s2270_s26  ;;  %p2273_p7 = scmp.lt.s32.totalorder %s2271_s12, %s2265_s29 }
0x1881   : > { %p2268_p9 = pneg %p2267_p8 }
0x1882   : > { %p2274_p0 = por %p2273_p7, %p2272_p4 }
0x1884   : > { %p2275_p13 = pnand %p2274_p0, %p2268_p9 }
0x18dd   : > { %v1560_v62 = vpop.permute.xlu1 %1559 }
0x18de   : > { %1563 = vst.msk [vmem:[#allocation2 + $0xe] sm:$0x3] %vm820_vm3, %v1560_v62  ;;  %1564 = vst.msk [vmem:[%s2605_s13] sm:$0x3] %vm820_vm3, %v1560_v62 }
0x18df   : > { %2278 = shalt.err (!%p2275_p13)
}
0x18e0   : > { %s2279_s17 = scalar_lea.hbm %s2765_s6, 32  ;;  %s2283_s24 = scalar_lea.hbm %s2816_s4, 64 }
0x18e1   : > { %p2280_p12 = scmp.ne.s32.totalorder %s2765_s6, %s2279_s17  ;;  %p2284_p3 = scmp.lt.u32.totalorder %s2765_s6, %s2816_s4 }
0x18e2   : > { %p2285_p5 = scmp.lt.u32.totalorder %s2283_s24, %s2279_s17  ;;  %p2287_p10 = scmp.lt.u32.totalorder %s2279_s17, %s2765_s6 }
0x18e3   : > { %p2281_p6 = pnand %p2280_p12, %p2836_p1 }
0x18e4   : > { %p2286_p11 = por %p2285_p5, %p2284_p3 }
0x18e5   : > { %p2282_p2 = pneg %p2281_p6 }
0x18e6   : > { %p2288_p8 = por %p2287_p10, %p2286_p11 }
0x18e8   : > { %p2289_p9 = pnand %p2288_p8, %p2282_p2 }
0x18ea   : > { %2292 = shalt.err (!%p2289_p9)
}
0x18eb   : > { %2030 = dma.vmem_to_hbm [thread:$0]  (%p2836_p1), %s2767_s27, 32, %s2765_s6, %s1571_s15  }
0x18ec PF: > { %s1614_s10 = sand.u32 1, %s2327_s18   ;;  %p2837_p4 = scmp.ne.s32.totalorder %s2825_s7, 0 }
0x18ed   : > { %p2838_p7 = scmp.ge.s32.totalorder %s2339_s21, 2  ;;  %s1615_s23 = scalar_lea.sflag [#allocation6], %s1614_s10 }
0x18ef   : > { %p2046_p0 = pnand %p2838_p7, %p2837_p4 }
0x18f1   : > { %2318 = dma.done.wait (!%p2046_p0), %s1615_s23, 32  }
0x18f2   : > { %2320 = vsyncadd (!%p2046_p0), %s1615_s23, 4294967264  ;;  %s1624_s11 = scalar_lea.sflag [#allocation12], %s1614_s10 }
0x18f3   : > { %2322 = dma.done.wait (!%p2046_p0), %s1624_s11, 32  }
0x18f4   : > { %2324 = vsyncadd (!%p2046_p0), %s1624_s11, 4294967264  ;;  %p23_p1 = scmp.ge.s32.totalorder %s2409_s22, 4   ;;  %s2839_s18 = smov %s2331_s19 }
0x18f5   : > { %s2840_s19 = smov %s2335_s20  ;;  %s2841_s20 = smov %s2420_s25 }
0x18f6   : > { %s2842_s21 = smov %s2409_s22  ;;  %25 = sbr.rel (!%p23_p1) target bundleno = 8 (0x8), region = 139 }
0x18fd   :  { %1629 = vsyncpa [#allocation5], 1 }
0x18fe   :  { %1631 = vsyncpa [#allocation5 + $0x1], 1 }
0x18ff   :  { %1632 = vsyncpa [#allocation8], 1 }
0x1900   :  { %1634 = vsyncpa [#allocation8 + $0x1], 1 }
0x1901   :  { %1635 = vsyncpa [#allocation6], 1 }
0x1902   :  { %1637 = vsyncpa [#allocation6 + $0x1], 1 }
0x1903   :  { %1638 = vsyncpa [#allocation12], 1 }
0x1904   :  { %1640 = vsyncpa [#allocation12 + $0x1], 1 }

</bundles_post_ra>
